<compile_context>
chip_gen: v7x
topology: tpu7x:2x2x1
jax: 0.10.0
libtpu: 0.0.40
codegen_flags: <defaults>
</compile_context>

<pallas_src>
import math
import functools

import numpy as np
import jax
import jax.numpy as jnp
from jax.experimental import pallas as pl
from jax.experimental.pallas import tpu as pltpu


def _round_up(x, m):
    return ((x + m - 1) // m) * m


def _gaussian_1d(window_size, sigma=1.5):
    # Identical to create_window()'s normalized 1D gaussian.
    g = np.array([math.exp(-((x - window_size // 2) ** 2) / (2.0 * sigma ** 2))
                  for x in range(window_size)], dtype=np.float64)
    return (g / g.sum()).astype(np.float32)


def _ssim_kernel(x1_ref, x2_ref, gv_ref, gh_ref, out_ref, *, B, H, W, Wp_a):
    """One grid step = B zero-padded (n, c) planes.

    x1_ref, x2_ref : (B, Hp_a, Wp_a) f32, zero padded + (8,128)-aligned
    gv_ref         : (H_o, Hp_a)  banded Gaussian (vertical pass)
    gh_ref         : (Wp_a, W_o)  banded Gaussian (horizontal pass)
    out_ref        : (1, B, W_o)  per-plane per-column partial sums
    """
    C1 = 0.01 ** 2
    C2 = 0.03 ** 2

    gv = gv_ref[...]                      # (H_o, Hp_a)
    gh = gh_ref[...]                      # (Wp_a, W_o)
    H_o = gv.shape[0]
    W_o = gh.shape[1]

    # ---- vertical Gaussian pass: ONE MXU matmul per plane ------------------
    # Zero padding of img*img == (padded img)*(padded img), so the padded
    # inputs are reused directly for the second-moment blurs. The 5 moments
    # are stacked along lanes (Wp_a multiple of 128 keeps every block tile
    # aligned), so the vertical blur of all 5 is a single Gv @ (Hp_a, 5*Wp_a).
    u_parts = []
    for b in range(B):                    # B is VMEM-budgeted (<= 8)
        x1 = x1_ref[b]                    # (Hp_a, Wp_a)
        x2 = x2_ref[b]
        s = jnp.concatenate([x1, x2, x1 * x1, x2 * x2, x1 * x2], axis=1)
        u_parts.append(jnp.dot(gv, s, preferred_element_type=jnp.float32))
    u = jnp.concatenate(u_parts, axis=0)  # (B*H_o, 5*Wp_a)

    # ---- horizontal Gaussian pass: ONE matmul per moment for all planes ----
    def hpass(k):                         # lane-tile-aligned static slice
        return jnp.dot(u[:, k * Wp_a:(k + 1) * Wp_a], gh,
                       preferred_element_type=jnp.float32)   # (B*H_o, W_o)

    mu1 = hpass(0)
    mu2 = hpass(1)
    e11 = hpass(2)
    e22 = hpass(3)
    e12 = hpass(4)

    mu1_sq = mu1 * mu1
    mu2_sq = mu2 * mu2
    mu1_mu2 = mu1 * mu2
    sigma1_sq = e11 - mu1_sq
    sigma2_sq = e22 - mu2_sq
    sigma12 = e12 - mu1_mu2

    num = (2.0 * mu1_mu2 + C1) * (2.0 * sigma12 + C2)
    den = (mu1_sq + mu2_sq + C1) * (sigma1_sq + sigma2_sq + C2)
    # Divide on the EUP (exact reciprocal), off the VPU critical path.
    ssim_map = (num * pl.reciprocal(den, approx=False)).reshape(B, H_o, W_o)

    # Alignment-padding positions (row >= H or col >= W) evaluate to exactly 1
    # (mu == sigma == 0 there) and must be excluded from the sums.
    row = jax.lax.broadcasted_iota(jnp.int32, (1, H_o, W_o), 1)
    col = jax.lax.broadcasted_iota(jnp.int32, (1, H_o, W_o), 2)
    valid = (row < H) & (col < W)
    # Per-plane per-column sums: one lane-dense (B, W_o) store per step.
    out_ref[0] = jnp.sum(jnp.where(valid, ssim_map, 0.0), axis=1)


def ssim(img1, img2, window_size=11, size_average=True):
    """Pallas-TPU SSIM. img1, img2: (N, C, H, W) arrays (NCHW layout)."""
    N, C, H, W = img1.shape
    K = window_size
    p = K // 2
    NC = N * C

    # (8,128)-aligned padded-plane and output sizes.
    Hp_a = _round_up(H + 2 * p, 8)
    Wp_a = _round_up(W + 2 * p, 128)
    H_o = _round_up(H, 8)
    W_o = _round_up(W, 128)

    g = _gaussian_1d(K)

    # Banded separable-Gaussian matrices: conv2d(q, window, pad=p) becomes
    #   (Gv @ q_padded) @ Gh
    # (the 2D window is outer(g, g) and symmetric, so corr == conv).
    gh_np = np.zeros((Wp_a, W_o), np.float32)
    for j in range(W):
        gh_np[j:j + K, j] = g
    gv_np = np.zeros((H_o, Hp_a), np.float32)
    for i in range(H):
        gv_np[i, i:i + K] = g
    Gh = jnp.asarray(gh_np)
    Gv = jnp.asarray(gv_np)

    # Planes per grid step: amortize per-step overhead for small planes while
    # keeping the per-step VMEM footprint modest on all generations
    # (v7x has 64 MiB VMEM vs 128 MiB on v5e/v6e). B*H_o <= 128 keeps the
    # batched horizontal matmuls at an MXU-friendly row count.
    plane_bytes = Hp_a * Wp_a * 4
    B = max(1, min(8, NC, (1024 * 1024) // plane_bytes))
    G = -(-NC // B)
    NC_pad = G * B

    def prep(img):
        x = img.reshape(NC, H, W).astype(jnp.float32)
        return jnp.pad(x, ((0, NC_pad - NC),
                           (p, Hp_a - H - p),
                           (p, Wp_a - W - p)))

    x1 = prep(img1)
    x2 = prep(img2)

    kernel = functools.partial(_ssim_kernel, B=B, H=H, W=W, Wp_a=Wp_a)
    sums = pl.pallas_call(
        kernel,
        out_shape=jax.ShapeDtypeStruct((G, B, W_o), jnp.float32),
        grid=(G,),
        in_specs=[
            pl.BlockSpec((B, Hp_a, Wp_a), lambda i: (i, 0, 0)),
            pl.BlockSpec((B, Hp_a, Wp_a), lambda i: (i, 0, 0)),
            pl.BlockSpec((H_o, Hp_a), lambda i: (0, 0)),   # fetched once, reused
            pl.BlockSpec((Wp_a, W_o), lambda i: (0, 0)),   # fetched once, reused
        ],
        out_specs=pl.BlockSpec((1, B, W_o), lambda i: (i, 0, 0)),
        compiler_params=pltpu.CompilerParams(
            dimension_semantics=("parallel",),             # v7x: 2 TCs
            vmem_limit_bytes=48 * 1024 * 1024),
    )(x1, x2, Gv, Gh)

    plane_sums = jnp.sum(sums, axis=2).reshape(-1)[:NC]    # (NC,)
    if size_average:
        # matches ssim_map.mean()
        return jnp.sum(plane_sums) / (NC * H * W)
    # matches ssim_map.mean(1).mean(1).mean(1) -> shape (N,)
    return jnp.sum(plane_sums.reshape(N, C), axis=1) / (C * H * W)


def _ssim_ref(img1, img2, window_size=11, size_average=True):
    """Plain-JAX reference (same math as the PyTorch module) for validation."""
    N, C, H, W = img1.shape
    x1 = img1.reshape(N * C, H, W).astype(jnp.float32)
    x2 = img2.reshape(N * C, H, W).astype(jnp.float32)
    g = jnp.asarray(_gaussian_1d(window_size))
    p = window_size // 2

    def blur(x):
        xp = jnp.pad(x, ((0, 0), (p, p), (p, p)))
        t = sum(g[k] * xp[:, :, k:k + W] for k in range(window_size))
        return sum(g[k] * t[:, k:k + H, :] for k in range(window_size))

    mu1, mu2 = blur(x1), blur(x2)
    s11 = blur(x1 * x1) - mu1 * mu1
    s22 = blur(x2 * x2) - mu2 * mu2
    s12 = blur(x1 * x2) - mu1 * mu2
    C1, C2 = 0.01 ** 2, 0.03 ** 2
    m = ((2 * mu1 * mu2 + C1) * (2 * s12 + C2)) / (
        (mu1 * mu1 + mu2 * mu2 + C1) * (s11 + s22 + C2))
    if size_average:
        return m.mean()
    return m.reshape(N, C, H, W).mean(axis=(1, 2, 3))


if __name__ == "__main__":
    key = jax.random.PRNGKey(0)
    k1, k2 = jax.random.split(key)
    img1 = jax.random.uniform(k1, (2, 4, 16, 16), dtype=jnp.float32)
    img2 = jax.random.uniform(k2, (2, 4, 16, 16), dtype=jnp.float32)

    out = jax.block_until_ready(ssim(img1, img2))        # size_average=True
    assert out.shape == (), out.shape

    # SSIM of an image with itself is 1 (num == den structurally).
    self_ssim = jax.block_until_ready(ssim(img1, img1))
    assert abs(float(self_ssim) - 1.0) < 1e-4, float(self_ssim)

    # Cross-check against the plain-JAX reference of the same math.
    ref = jax.block_until_ready(_ssim_ref(img1, img2))
    assert abs(float(out) - float(ref)) < 2e-2, (float(out), float(ref))

    # size_average=False path -> per-batch values, shape (N,)
    per_n = jax.block_until_ready(ssim(img1, img2, size_average=False))
    assert per_n.shape == (2,), per_n.shape
    per_n_ref = jax.block_until_ready(_ssim_ref(img1, img2, size_average=False))
    assert float(jnp.max(jnp.abs(per_n - per_n_ref))) < 2e-2

    print("KERNEL_OK")
</pallas_src>

<mosaic_0001>
module attributes {stable_mosaic.version = 11 : i64} {
  func.func @_ssim_kernel(%arg0: i32, %arg1: memref<8x32x128xf32, #tpu.memory_space<vmem>>, %arg2: memref<8x32x128xf32, #tpu.memory_space<vmem>>, %arg3: memref<16x32xf32, #tpu.memory_space<vmem>>, %arg4: memref<128x128xf32, #tpu.memory_space<vmem>>, %arg5: memref<1x8x128xf32, #tpu.memory_space<vmem>>) attributes {dimension_semantics = [#tpu.dimension_semantics<parallel>], iteration_bounds = array<i64: 1>, scalar_prefetch = 0 : i64, scratch_operands = 0 : i64, tpu.core_type = #tpu.core_type<tc>, window_params = [{transform_indices = @transform_0, window_bounds = array<i64: 8, 32, 128>}, {transform_indices = @transform_1, window_bounds = array<i64: 8, 32, 128>}, {pipeline_mode = #tpu.pipeline_mode<synchronous>, transform_indices = @transform_2, window_bounds = array<i64: 16, 32>}, {pipeline_mode = #tpu.pipeline_mode<synchronous>, transform_indices = @transform_3, window_bounds = array<i64: 128, 128>}, {transform_indices = @transform_4, window_bounds = array<i64: 1, 8, 128>}]} {
    %c0 = arith.constant 0 : index
    %c0_0 = arith.constant 0 : index
    %0 = vector.load %arg3[%c0, %c0_0] : memref<16x32xf32, #tpu.memory_space<vmem>>, vector<16x32xf32>
    %c0_1 = arith.constant 0 : index
    %c0_2 = arith.constant 0 : index
    %1 = vector.load %arg4[%c0_1, %c0_2] : memref<128x128xf32, #tpu.memory_space<vmem>>, vector<128x128xf32>
    %c0_3 = arith.constant 0 : index
    %c0_4 = arith.constant 0 : index
    %c0_5 = arith.constant 0 : index
    %2 = vector.load %arg1[%c0_3, %c0_4, %c0_5] : memref<8x32x128xf32, #tpu.memory_space<vmem>>, vector<1x32x128xf32>
    %3 = vector.shape_cast %2 : vector<1x32x128xf32> to vector<32x128xf32>
    %c0_6 = arith.constant 0 : index
    %c0_7 = arith.constant 0 : index
    %c0_8 = arith.constant 0 : index
    %4 = vector.load %arg2[%c0_6, %c0_7, %c0_8] : memref<8x32x128xf32, #tpu.memory_space<vmem>>, vector<1x32x128xf32>
    %5 = vector.shape_cast %4 : vector<1x32x128xf32> to vector<32x128xf32>
    %6 = arith.mulf %3, %3 : vector<32x128xf32>
    %7 = arith.mulf %5, %5 : vector<32x128xf32>
    %8 = arith.mulf %3, %5 : vector<32x128xf32>
    %9 = tpu.concatenate %3, %5, %6, %7, %8 in 1 : vector<32x128xf32>, vector<32x128xf32>, vector<32x128xf32>, vector<32x128xf32>, vector<32x128xf32> -> vector<32x640xf32>
    %cst = arith.constant dense<0.000000e+00> : vector<16x640xf32>
    %10 = tpu.matmul %0, %9, %cst {dimension_numbers = #tpu.dot_dimension_numbers<[1], [0], [0], [1], [0, 0, 1, 1], [], []>} : vector<16x32xf32>, vector<32x640xf32>, vector<16x640xf32> -> vector<16x640xf32>
    %c1 = arith.constant 1 : index
    %c0_9 = arith.constant 0 : index
    %c0_10 = arith.constant 0 : index
    %11 = vector.load %arg1[%c1, %c0_9, %c0_10] : memref<8x32x128xf32, #tpu.memory_space<vmem>>, vector<1x32x128xf32>
    %12 = vector.shape_cast %11 : vector<1x32x128xf32> to vector<32x128xf32>
    %c1_11 = arith.constant 1 : index
    %c0_12 = arith.constant 0 : index
    %c0_13 = arith.constant 0 : index
    %13 = vector.load %arg2[%c1_11, %c0_12, %c0_13] : memref<8x32x128xf32, #tpu.memory_space<vmem>>, vector<1x32x128xf32>
    %14 = vector.shape_cast %13 : vector<1x32x128xf32> to vector<32x128xf32>
    %15 = arith.mulf %12, %12 : vector<32x128xf32>
    %16 = arith.mulf %14, %14 : vector<32x128xf32>
    %17 = arith.mulf %12, %14 : vector<32x128xf32>
    %18 = tpu.concatenate %12, %14, %15, %16, %17 in 1 : vector<32x128xf32>, vector<32x128xf32>, vector<32x128xf32>, vector<32x128xf32>, vector<32x128xf32> -> vector<32x640xf32>
    %cst_14 = arith.constant dense<0.000000e+00> : vector<16x640xf32>
    %19 = tpu.matmul %0, %18, %cst_14 {dimension_numbers = #tpu.dot_dimension_numbers<[1], [0], [0], [1], [0, 0, 1, 1], [], []>} : vector<16x32xf32>, vector<32x640xf32>, vector<16x640xf32> -> vector<16x640xf32>
    %c2 = arith.constant 2 : index
    %c0_15 = arith.constant 0 : index
    %c0_16 = arith.constant 0 : index
    %20 = vector.load %arg1[%c2, %c0_15, %c0_16] : memref<8x32x128xf32, #tpu.memory_space<vmem>>, vector<1x32x128xf32>
    %21 = vector.shape_cast %20 : vector<1x32x128xf32> to vector<32x128xf32>
    %c2_17 = arith.constant 2 : index
    %c0_18 = arith.constant 0 : index
    %c0_19 = arith.constant 0 : index
    %22 = vector.load %arg2[%c2_17, %c0_18, %c0_19] : memref<8x32x128xf32, #tpu.memory_space<vmem>>, vector<1x32x128xf32>
    %23 = vector.shape_cast %22 : vector<1x32x128xf32> to vector<32x128xf32>
    %24 = arith.mulf %21, %21 : vector<32x128xf32>
    %25 = arith.mulf %23, %23 : vector<32x128xf32>
    %26 = arith.mulf %21, %23 : vector<32x128xf32>
    %27 = tpu.concatenate %21, %23, %24, %25, %26 in 1 : vector<32x128xf32>, vector<32x128xf32>, vector<32x128xf32>, vector<32x128xf32>, vector<32x128xf32> -> vector<32x640xf32>
    %cst_20 = arith.constant dense<0.000000e+00> : vector<16x640xf32>
    %28 = tpu.matmul %0, %27, %cst_20 {dimension_numbers = #tpu.dot_dimension_numbers<[1], [0], [0], [1], [0, 0, 1, 1], [], []>} : vector<16x32xf32>, vector<32x640xf32>, vector<16x640xf32> -> vector<16x640xf32>
    %c3 = arith.constant 3 : index
    %c0_21 = arith.constant 0 : index
    %c0_22 = arith.constant 0 : index
    %29 = vector.load %arg1[%c3, %c0_21, %c0_22] : memref<8x32x128xf32, #tpu.memory_space<vmem>>, vector<1x32x128xf32>
    %30 = vector.shape_cast %29 : vector<1x32x128xf32> to vector<32x128xf32>
    %c3_23 = arith.constant 3 : index
    %c0_24 = arith.constant 0 : index
    %c0_25 = arith.constant 0 : index
    %31 = vector.load %arg2[%c3_23, %c0_24, %c0_25] : memref<8x32x128xf32, #tpu.memory_space<vmem>>, vector<1x32x128xf32>
    %32 = vector.shape_cast %31 : vector<1x32x128xf32> to vector<32x128xf32>
    %33 = arith.mulf %30, %30 : vector<32x128xf32>
    %34 = arith.mulf %32, %32 : vector<32x128xf32>
    %35 = arith.mulf %30, %32 : vector<32x128xf32>
    %36 = tpu.concatenate %30, %32, %33, %34, %35 in 1 : vector<32x128xf32>, vector<32x128xf32>, vector<32x128xf32>, vector<32x128xf32>, vector<32x128xf32> -> vector<32x640xf32>
    %cst_26 = arith.constant dense<0.000000e+00> : vector<16x640xf32>
    %37 = tpu.matmul %0, %36, %cst_26 {dimension_numbers = #tpu.dot_dimension_numbers<[1], [0], [0], [1], [0, 0, 1, 1], [], []>} : vector<16x32xf32>, vector<32x640xf32>, vector<16x640xf32> -> vector<16x640xf32>
    %c4 = arith.constant 4 : index
    %c0_27 = arith.constant 0 : index
    %c0_28 = arith.constant 0 : index
    %38 = vector.load %arg1[%c4, %c0_27, %c0_28] : memref<8x32x128xf32, #tpu.memory_space<vmem>>, vector<1x32x128xf32>
    %39 = vector.shape_cast %38 : vector<1x32x128xf32> to vector<32x128xf32>
    %c4_29 = arith.constant 4 : index
    %c0_30 = arith.constant 0 : index
    %c0_31 = arith.constant 0 : index
    %40 = vector.load %arg2[%c4_29, %c0_30, %c0_31] : memref<8x32x128xf32, #tpu.memory_space<vmem>>, vector<1x32x128xf32>
    %41 = vector.shape_cast %40 : vector<1x32x128xf32> to vector<32x128xf32>
    %42 = arith.mulf %39, %39 : vector<32x128xf32>
    %43 = arith.mulf %41, %41 : vector<32x128xf32>
    %44 = arith.mulf %39, %41 : vector<32x128xf32>
    %45 = tpu.concatenate %39, %41, %42, %43, %44 in 1 : vector<32x128xf32>, vector<32x128xf32>, vector<32x128xf32>, vector<32x128xf32>, vector<32x128xf32> -> vector<32x640xf32>
    %cst_32 = arith.constant dense<0.000000e+00> : vector<16x640xf32>
    %46 = tpu.matmul %0, %45, %cst_32 {dimension_numbers = #tpu.dot_dimension_numbers<[1], [0], [0], [1], [0, 0, 1, 1], [], []>} : vector<16x32xf32>, vector<32x640xf32>, vector<16x640xf32> -> vector<16x640xf32>
    %c5 = arith.constant 5 : index
    %c0_33 = arith.constant 0 : index
    %c0_34 = arith.constant 0 : index
    %47 = vector.load %arg1[%c5, %c0_33, %c0_34] : memref<8x32x128xf32, #tpu.memory_space<vmem>>, vector<1x32x128xf32>
    %48 = vector.shape_cast %47 : vector<1x32x128xf32> to vector<32x128xf32>
    %c5_35 = arith.constant 5 : index
    %c0_36 = arith.constant 0 : index
    %c0_37 = arith.constant 0 : index
    %49 = vector.load %arg2[%c5_35, %c0_36, %c0_37] : memref<8x32x128xf32, #tpu.memory_space<vmem>>, vector<1x32x128xf32>
    %50 = vector.shape_cast %49 : vector<1x32x128xf32> to vector<32x128xf32>
    %51 = arith.mulf %48, %48 : vector<32x128xf32>
    %52 = arith.mulf %50, %50 : vector<32x128xf32>
    %53 = arith.mulf %48, %50 : vector<32x128xf32>
    %54 = tpu.concatenate %48, %50, %51, %52, %53 in 1 : vector<32x128xf32>, vector<32x128xf32>, vector<32x128xf32>, vector<32x128xf32>, vector<32x128xf32> -> vector<32x640xf32>
    %cst_38 = arith.constant dense<0.000000e+00> : vector<16x640xf32>
    %55 = tpu.matmul %0, %54, %cst_38 {dimension_numbers = #tpu.dot_dimension_numbers<[1], [0], [0], [1], [0, 0, 1, 1], [], []>} : vector<16x32xf32>, vector<32x640xf32>, vector<16x640xf32> -> vector<16x640xf32>
    %c6 = arith.constant 6 : index
    %c0_39 = arith.constant 0 : index
    %c0_40 = arith.constant 0 : index
    %56 = vector.load %arg1[%c6, %c0_39, %c0_40] : memref<8x32x128xf32, #tpu.memory_space<vmem>>, vector<1x32x128xf32>
    %57 = vector.shape_cast %56 : vector<1x32x128xf32> to vector<32x128xf32>
    %c6_41 = arith.constant 6 : index
    %c0_42 = arith.constant 0 : index
    %c0_43 = arith.constant 0 : index
    %58 = vector.load %arg2[%c6_41, %c0_42, %c0_43] : memref<8x32x128xf32, #tpu.memory_space<vmem>>, vector<1x32x128xf32>
    %59 = vector.shape_cast %58 : vector<1x32x128xf32> to vector<32x128xf32>
    %60 = arith.mulf %57, %57 : vector<32x128xf32>
    %61 = arith.mulf %59, %59 : vector<32x128xf32>
    %62 = arith.mulf %57, %59 : vector<32x128xf32>
    %63 = tpu.concatenate %57, %59, %60, %61, %62 in 1 : vector<32x128xf32>, vector<32x128xf32>, vector<32x128xf32>, vector<32x128xf32>, vector<32x128xf32> -> vector<32x640xf32>
    %cst_44 = arith.constant dense<0.000000e+00> : vector<16x640xf32>
    %64 = tpu.matmul %0, %63, %cst_44 {dimension_numbers = #tpu.dot_dimension_numbers<[1], [0], [0], [1], [0, 0, 1, 1], [], []>} : vector<16x32xf32>, vector<32x640xf32>, vector<16x640xf32> -> vector<16x640xf32>
    %c7 = arith.constant 7 : index
    %c0_45 = arith.constant 0 : index
    %c0_46 = arith.constant 0 : index
    %65 = vector.load %arg1[%c7, %c0_45, %c0_46] : memref<8x32x128xf32, #tpu.memory_space<vmem>>, vector<1x32x128xf32>
    %66 = vector.shape_cast %65 : vector<1x32x128xf32> to vector<32x128xf32>
    %c7_47 = arith.constant 7 : index
    %c0_48 = arith.constant 0 : index
    %c0_49 = arith.constant 0 : index
    %67 = vector.load %arg2[%c7_47, %c0_48, %c0_49] : memref<8x32x128xf32, #tpu.memory_space<vmem>>, vector<1x32x128xf32>
    %68 = vector.shape_cast %67 : vector<1x32x128xf32> to vector<32x128xf32>
    %69 = arith.mulf %66, %66 : vector<32x128xf32>
    %70 = arith.mulf %68, %68 : vector<32x128xf32>
    %71 = arith.mulf %66, %68 : vector<32x128xf32>
    %72 = tpu.concatenate %66, %68, %69, %70, %71 in 1 : vector<32x128xf32>, vector<32x128xf32>, vector<32x128xf32>, vector<32x128xf32>, vector<32x128xf32> -> vector<32x640xf32>
    %cst_50 = arith.constant dense<0.000000e+00> : vector<16x640xf32>
    %73 = tpu.matmul %0, %72, %cst_50 {dimension_numbers = #tpu.dot_dimension_numbers<[1], [0], [0], [1], [0, 0, 1, 1], [], []>} : vector<16x32xf32>, vector<32x640xf32>, vector<16x640xf32> -> vector<16x640xf32>
    %74 = tpu.concatenate %10, %19, %28, %37, %46, %55, %64, %73 in 0 : vector<16x640xf32>, vector<16x640xf32>, vector<16x640xf32>, vector<16x640xf32>, vector<16x640xf32>, vector<16x640xf32>, vector<16x640xf32>, vector<16x640xf32> -> vector<128x640xf32>
    %75 = vector.extract_strided_slice %74 {offsets = [0, 0], sizes = [128, 128], strides = [1, 1]} : vector<128x640xf32> to vector<128x128xf32>
    %cst_51 = arith.constant dense<0.000000e+00> : vector<128x128xf32>
    %76 = tpu.matmul %75, %1, %cst_51 {dimension_numbers = #tpu.dot_dimension_numbers<[1], [0], [0], [1], [0, 0, 1, 1], [], []>} : vector<128x128xf32>, vector<128x128xf32>, vector<128x128xf32> -> vector<128x128xf32>
    %77 = vector.extract_strided_slice %74 {offsets = [0, 128], sizes = [128, 128], strides = [1, 1]} : vector<128x640xf32> to vector<128x128xf32>
    %cst_52 = arith.constant dense<0.000000e+00> : vector<128x128xf32>
    %78 = tpu.matmul %77, %1, %cst_52 {dimension_numbers = #tpu.dot_dimension_numbers<[1], [0], [0], [1], [0, 0, 1, 1], [], []>} : vector<128x128xf32>, vector<128x128xf32>, vector<128x128xf32> -> vector<128x128xf32>
    %79 = vector.extract_strided_slice %74 {offsets = [0, 256], sizes = [128, 128], strides = [1, 1]} : vector<128x640xf32> to vector<128x128xf32>
    %cst_53 = arith.constant dense<0.000000e+00> : vector<128x128xf32>
    %80 = tpu.matmul %79, %1, %cst_53 {dimension_numbers = #tpu.dot_dimension_numbers<[1], [0], [0], [1], [0, 0, 1, 1], [], []>} : vector<128x128xf32>, vector<128x128xf32>, vector<128x128xf32> -> vector<128x128xf32>
    %81 = vector.extract_strided_slice %74 {offsets = [0, 384], sizes = [128, 128], strides = [1, 1]} : vector<128x640xf32> to vector<128x128xf32>
    %cst_54 = arith.constant dense<0.000000e+00> : vector<128x128xf32>
    %82 = tpu.matmul %81, %1, %cst_54 {dimension_numbers = #tpu.dot_dimension_numbers<[1], [0], [0], [1], [0, 0, 1, 1], [], []>} : vector<128x128xf32>, vector<128x128xf32>, vector<128x128xf32> -> vector<128x128xf32>
    %83 = vector.extract_strided_slice %74 {offsets = [0, 512], sizes = [128, 128], strides = [1, 1]} : vector<128x640xf32> to vector<128x128xf32>
    %cst_55 = arith.constant dense<0.000000e+00> : vector<128x128xf32>
    %84 = tpu.matmul %83, %1, %cst_55 {dimension_numbers = #tpu.dot_dimension_numbers<[1], [0], [0], [1], [0, 0, 1, 1], [], []>} : vector<128x128xf32>, vector<128x128xf32>, vector<128x128xf32> -> vector<128x128xf32>
    %85 = arith.mulf %76, %76 : vector<128x128xf32>
    %86 = arith.mulf %78, %78 : vector<128x128xf32>
    %87 = arith.mulf %76, %78 : vector<128x128xf32>
    %88 = arith.subf %80, %85 : vector<128x128xf32>
    %89 = arith.subf %82, %86 : vector<128x128xf32>
    %90 = arith.subf %84, %87 : vector<128x128xf32>
    %cst_56 = arith.constant 2.000000e+00 : f32
    %91 = vector.broadcast %cst_56 : f32 to vector<128x128xf32>
    %92 = arith.mulf %91, %87 : vector<128x128xf32>
    %cst_57 = arith.constant 9.99999974E-5 : f32
    %93 = vector.broadcast %cst_57 : f32 to vector<128x128xf32>
    %94 = arith.addf %92, %93 : vector<128x128xf32>
    %cst_58 = arith.constant 2.000000e+00 : f32
    %95 = vector.broadcast %cst_58 : f32 to vector<128x128xf32>
    %96 = arith.mulf %95, %90 : vector<128x128xf32>
    %cst_59 = arith.constant 8.99999984E-4 : f32
    %97 = vector.broadcast %cst_59 : f32 to vector<128x128xf32>
    %98 = arith.addf %96, %97 : vector<128x128xf32>
    %99 = arith.mulf %94, %98 : vector<128x128xf32>
    %100 = arith.addf %85, %86 : vector<128x128xf32>
    %cst_60 = arith.constant 9.99999974E-5 : f32
    %101 = vector.broadcast %cst_60 : f32 to vector<128x128xf32>
    %102 = arith.addf %100, %101 : vector<128x128xf32>
    %103 = arith.addf %88, %89 : vector<128x128xf32>
    %cst_61 = arith.constant 8.99999984E-4 : f32
    %104 = vector.broadcast %cst_61 : f32 to vector<128x128xf32>
    %105 = arith.addf %103, %104 : vector<128x128xf32>
    %106 = arith.mulf %102, %105 : vector<128x128xf32>
    %107 = tpu.reciprocal %106 : vector<128x128xf32> -> vector<128x128xf32>
    %108 = arith.mulf %99, %107 : vector<128x128xf32>
    %109 = vector.shape_cast %108 : vector<128x128xf32> to vector<8x16x128xf32>
    %110 = tpu.iota {dimensions = array<i32: 1>} : vector<1x16x128xi32>
    %111 = tpu.iota {dimensions = array<i32: 2>} : vector<1x16x128xi32>
    %c16_i32 = arith.constant 16 : i32
    %112 = vector.broadcast %c16_i32 : i32 to vector<1x16x128xi32>
    %113 = arith.cmpi slt, %110, %112 : vector<1x16x128xi32>
    %c16_i32_62 = arith.constant 16 : i32
    %114 = vector.broadcast %c16_i32_62 : i32 to vector<1x16x128xi32>
    %115 = arith.cmpi slt, %111, %114 : vector<1x16x128xi32>
    %116 = arith.andi %113, %115 : vector<1x16x128xi1>
    %cst_63 = arith.constant 0.000000e+00 : f32
    %117 = vector.shape_cast %116 : vector<1x16x128xi1> to vector<1x16x128xi1>
    %118 = vector.broadcast %117 : vector<1x16x128xi1> to vector<8x16x128xi1>
    %119 = vector.broadcast %cst_63 : f32 to vector<8x16x128xf32>
    %120 = arith.select %118, %109, %119 : vector<8x16x128xi1>, vector<8x16x128xf32>
    %cst_64 = arith.constant dense<0.000000e+00> : vector<8x128xf32>
    %121 = vector.multi_reduction <add>, %120, %cst_64 [1] : vector<8x16x128xf32> to vector<8x128xf32>
    %c0_65 = arith.constant 0 : index
    %c0_66 = arith.constant 0 : index
    %c0_67 = arith.constant 0 : index
    %122 = vector.load %arg5[%c0_65, %c0_66, %c0_67] : memref<1x8x128xf32, #tpu.memory_space<vmem>>, vector<1x8x128xf32>
    %123 = vector.shape_cast %122 : vector<1x8x128xf32> to vector<8x128xf32>
    %124 = vector.shape_cast %121 : vector<8x128xf32> to vector<1x8x128xf32>
    tpu.vector_store %arg5[%c0_65, %c0_66, %c0_67], %124 {strides = array<i32>} : memref<1x8x128xf32, #tpu.memory_space<vmem>>, vector<1x8x128xf32>,
    return
  }
  func.func @transform_0(%arg0: i32) -> (i32, i32, i32) {
    %c0_i32 = arith.constant 0 : i32
    %c0_i32_0 = arith.constant 0 : i32
    %c0_i32_1 = arith.constant 0 : i32
    return %arg0, %c0_i32, %c0_i32_0 : i32, i32, i32
  }
  func.func @transform_1(%arg0: i32) -> (i32, i32, i32) {
    %c0_i32 = arith.constant 0 : i32
    %c0_i32_0 = arith.constant 0 : i32
    %c0_i32_1 = arith.constant 0 : i32
    return %arg0, %c0_i32, %c0_i32_0 : i32, i32, i32
  }
  func.func @transform_2(%arg0: i32) -> (i32, i32) {
    %c0_i32 = arith.constant 0 : i32
    %c0_i32_0 = arith.constant 0 : i32
    %c0_i32_1 = arith.constant 0 : i32
    return %c0_i32, %c0_i32_0 : i32, i32
  }
  func.func @transform_3(%arg0: i32) -> (i32, i32) {
    %c0_i32 = arith.constant 0 : i32
    %c0_i32_0 = arith.constant 0 : i32
    %c0_i32_1 = arith.constant 0 : i32
    return %c0_i32, %c0_i32_0 : i32, i32
  }
  func.func @transform_4(%arg0: i32) -> (i32, i32, i32) {
    %c0_i32 = arith.constant 0 : i32
    %c0_i32_0 = arith.constant 0 : i32
    %c0_i32_1 = arith.constant 0 : i32
    return %arg0, %c0_i32, %c0_i32_0 : i32, i32, i32
  }
}

</mosaic_0001>

<bundles_post_ra>
// kernel: tpu_custom_call.1
= control target key start
LH: loop header
LB: loop body
LE: loop exit
PB: predicated region body
PF: predicated region fallthrough
CT: control target
= control target key end

     0   :  { %9 = vsyncpa [#allocation3], 0  ;;  %s5263_s0 = inlined_call_operand.hbm [shape: f32[8,32,128], index: 0, kind: input, shape index: {}]   ;;  %s5264_s1 = inlined_call_operand.hbm [shape: f32[8,32,128], index: 1, kind: input, shape index: {}]   ;;  %s5265_s2 = inlined_call_operand.hbm [shape: f32[16,32], index: 2, kind: input, shape index: {}]   ;;  %s5266_s3 = inlined_call_operand.hbm [shape: f32[128,128], index: 3, kind: input, shape index: {}]   ;;  %s5267_s4 = inlined_call_operand.hbm [shape: f32[1,8,128], index: 4, kind: output, shape index: {}]  }
   0x1   :  { %10 = vsyncpa [#allocation6], 0 }
   0x2   :  { %11 = vsyncpa [#allocation9], 0 }
   0x3   :  { %12 = vsyncpa [#allocation4], 0  ;;  %s4394_s15 = smov [#allocation5]   ;;  %s4395_s17 = smov [#allocation2]  }
   0x4   :  { %s30_s16 = sshll.u32 %s4394_s15, 4  ;;  %s18_s18 = sshll.u32 %s4395_s17, 4  ;;  %s31_s16 = int_to_ptr.vmem [resolvable:$true] %s30_s16  ;;  %s4427_s18 = int_to_ptr.vmem [resolvable:$true] %s18_s18 }
   0x5   :  { %s4276_s21 = scalar_lea.hbm %s5264_s1, 4096 }
   0x6   :  { %p4277_p0 = scmp.ne.s32.totalorder %s5264_s1, %s4276_s21  ;;  %p4280_p1 = scmp.lt.u32.totalorder %s4276_s21, %s5264_s1 }
   0x8   :  { %p4282_p2 = pnand %p4280_p1, %p4277_p0 }
   0xa   :  { %4285 = shalt.err (!%p4282_p2)
}
   0xb   :  { %s4286_s26 = scalar_lea.vmem %s31_s16, 4096  ;;  %p4291_p4 = scmp.lt.s32.totalorder %s31_s16, %s31_s16 }
   0xc   :  { %p4287_p3 = scmp.ne.s32.totalorder %s31_s16, %s4286_s26  ;;  %p4292_p5 = scmp.lt.s32.totalorder %s4286_s26, %s4286_s26 }
   0xe   :  { %p4293_p6 = por %p4292_p5, %p4291_p4 }
  0x10   :  { %p4294_p7 = pnand %p4293_p6, %p4287_p3 }
  0x12   :  { %4297 = shalt.err (!%p4294_p7)
}
  0x13   :  { %s4396_s27 = smov 128   ;;  %s4397_s28 = smov 8  }
  0x14   :  { %36 = dma.hbm_to_vmem [thread:$0]  %s5264_s1, 4096, %s31_s16, [#allocation6], %s4396_s27, %s4396_s27, %s4397_s28  }
  0x15   :  { %s4298_s7 = scalar_lea.hbm %s5263_s0, 4096 }
  0x16   :  { %p4299_p8 = scmp.ne.s32.totalorder %s5263_s0, %s4298_s7  ;;  %p4302_p9 = scmp.lt.u32.totalorder %s4298_s7, %s5263_s0 }
  0x18   :  { %p4304_p10 = pnand %p4302_p9, %p4299_p8 }
  0x1a   :  { %4307 = shalt.err (!%p4304_p10)
}
  0x1b   :  { %s4308_s12 = scalar_lea.vmem %s4427_s18, 4096  ;;  %p4313_p12 = scmp.lt.s32.totalorder %s4427_s18, %s4427_s18 }
  0x1c   :  { %p4309_p11 = scmp.ne.s32.totalorder %s4427_s18, %s4308_s12  ;;  %p4314_p13 = scmp.lt.s32.totalorder %s4308_s12, %s4308_s12 }
  0x1e   :  { %p4315_p0 = por %p4314_p13, %p4313_p12 }
  0x20   :  { %p4316_p1 = pnand %p4315_p0, %p4309_p11 }
  0x22   :  { %4319 = shalt.err (!%p4316_p1)
}
  0x23   :  { %24 = dma.hbm_to_vmem [thread:$0]  %s5263_s0, 4096, %s4427_s18, [#allocation3], %s4396_s27, %s4396_s27, %s4397_s28  }
  0x24   :  { %s4398_s14 = smov [#allocation7]   ;;  %s4399_s16 = smov [#allocation8]  }
  0x25   :  { %s42_s15 = sshll.u32 %s4398_s14, 4  ;;  %s54_s17 = sshll.u32 %s4399_s16, 4  ;;  %s43_s15 = int_to_ptr.vmem [resolvable:$true] %s42_s15  ;;  %s4464_s17 = int_to_ptr.vmem [resolvable:$true] %s54_s17 }
  0x26   :  { %s4320_s21 = scalar_lea.hbm %s5265_s2, 256 }
  0x27   :  { %p4321_p2 = scmp.ne.s32.totalorder %s5265_s2, %s4320_s21  ;;  %p4324_p3 = scmp.lt.u32.totalorder %s4320_s21, %s5265_s2 }
  0x29   :  { %p4326_p4 = pnand %p4324_p3, %p4321_p2 }
  0x2b   :  { %4329 = shalt.err (!%p4326_p4)
}
  0x2c   :  { %s4330_s0 = scalar_lea.vmem %s43_s15, 256  ;;  %p4335_p6 = scmp.lt.s32.totalorder %s43_s15, %s43_s15 }
  0x2d   :  { %p4331_p5 = scmp.ne.s32.totalorder %s43_s15, %s4330_s0  ;;  %p4336_p7 = scmp.lt.s32.totalorder %s4330_s0, %s4330_s0 }
  0x2f   :  { %p4337_p8 = por %p4336_p7, %p4335_p6 }
  0x31   :  { %p4338_p9 = pnand %p4337_p8, %p4331_p5 }
  0x33   :  { %4341 = shalt.err (!%p4338_p9)
}
  0x34   :  { %48 = dma.hbm_to_vmem [thread:$0]  %s5265_s2, 256, %s43_s15, [#allocation6], %s4396_s27, %s4396_s27, %s4397_s28  }
  0x35   :  { %s4342_s5 = scalar_lea.hbm %s5266_s3, 2048 }
  0x36   :  { %p4343_p10 = scmp.ne.s32.totalorder %s5266_s3, %s4342_s5  ;;  %p4346_p11 = scmp.lt.u32.totalorder %s4342_s5, %s5266_s3 }
  0x38   :  { %p4348_p12 = pnand %p4346_p11, %p4343_p10 }
  0x3a   :  { %4351 = shalt.err (!%p4348_p12)
}
  0x3b   :  { %s4352_s10 = scalar_lea.vmem %s4464_s17, 2048  ;;  %p4357_p0 = scmp.lt.s32.totalorder %s4464_s17, %s4464_s17 }
  0x3c   :  { %p4353_p13 = scmp.ne.s32.totalorder %s4464_s17, %s4352_s10  ;;  %p4358_p1 = scmp.lt.s32.totalorder %s4352_s10, %s4352_s10 }
  0x3e   :  { %p4359_p2 = por %p4358_p1, %p4357_p0 }
  0x40   :  { %p4360_p3 = pnand %p4359_p2, %p4353_p13 }
  0x42   :  { %4363 = shalt.err (!%p4360_p3)
}
  0x43   :  { %60 = dma.hbm_to_vmem [thread:$0]  %s5266_s3, 2048, %s4464_s17, [#allocation9], %s4396_s27, %s4396_s27, %s4397_s28  }
  0x44   :  { %4386 = dma.done.wait [#allocation3], 4096  }
  0x45   :  { %4387 = vsyncadd [#allocation3], 4294963200 }
  0x46   :  { %4388 = dma.done.wait [#allocation6], 4352  }
  0x47   :  { %4389 = vsyncadd [#allocation6], 4294962944 }
  0x48   :  { %4390 = dma.done.wait [#allocation9], 2048  }
  0x49   :  { %4391 = vsyncadd [#allocation9], 4294965248  ;;  %v4400_v0 = vmov 0.0   ;;  %v95_v1 = vld [vmem:[#allocation5] sm:$0xff]  ;;  %v96_v2 = vld [vmem:[#allocation5 + $0x8] sm:$0xff]  ;;  %vm111_vm0 = vcmask 261120  }
  0x4a   :  { %259 = vmatprep.mubr.f32.mxu1 %v4400_v0  ;;  %182 = vmatprep.mubr.f32.mxu0 %v4400_v0  ;;  %v91_v3 = vld [vmem:[#allocation2] sm:$0xff]  ;;  %v103_v4 = vmul.f32 %v95_v1, %v95_v1  ;;  %v104_v5 = vmul.f32 %v96_v2, %v96_v2  ;;  %v92_v6 = vld [vmem:[#allocation2 + $0x8] sm:$0xff]  ;;  %v3868_v8 = vpack.c.bf16 %v96_v2, %v95_v1  ;;  %v97_v9 = vld [vmem:[#allocation5 + $0x10] sm:$0xff]  ;;  %vm3211_vm2 = vcmask 1041409   ;;  %s4401_s3 = smov [#allocation10]  }
  0x4b   :  { %v99_v7 = vmul.f32 %v91_v3, %v91_v3  ;;  %v98_v10 = vld [vmem:[#allocation5 + $0x18] sm:$0xff]  ;;  %v100_v11 = vmul.f32 %v92_v6, %v92_v6  ;;  %v3870_v12 = vpack.c.bf16 %v92_v6, %v91_v3  ;;  %v105_v13 = vmul.f32 %v97_v9, %v97_v9  ;;  %v93_v15 = vld [vmem:[#allocation2 + $0x10] sm:$0xff]  ;;  %v353_v24 = vld [vmem:[#allocation5 + $0x20] sm:$0xff]  ;;  %s3233_s27 = sshll.u32 %s4401_s3, 4  ;;  %s3234_s27 = int_to_ptr.vmem [resolvable:$true] %s3233_s27 }
  0x4c   :  { %v106_v14 = vmul.f32 %v98_v10, %v98_v10  ;;  %v94_v16 = vld [vmem:[#allocation2 + $0x18] sm:$0xff]  ;;  %v3876_v17 = vpack.c.bf16 %v104_v5, %v103_v4  ;;  %3869 = vmatprep.subr.bf16.mxu0 %v3868_v8  ;;  %v101_v18 = vmul.f32 %v93_v15, %v93_v15  ;;  %v3872_v20 = vpack.c.bf16 %v98_v10, %v97_v9  ;;  %v354_v25 = vld [vmem:[#allocation5 + $0x28] sm:$0xff]  ;;  %v348_v31 = vld [vmem:[#allocation2 + $0x20] sm:$0xff]  ;;  %s4364_s28 = scalar_lea.vmem %s3234_s27, 128  ;;  %p4369_p5 = scmp.lt.s32.totalorder %s3234_s27, %s3234_s27 }
  0x4d   :  { %v102_v19 = vmul.f32 %v94_v16, %v94_v16  ;;  %v3878_v21 = vpack.c.bf16 %v100_v11, %v99_v7  ;;  %3871 = vmatpush1.bf16.msra.mxu0 %v3870_v12  ;;  %v3874_v23 = vpack.c.bf16 %v94_v16, %v93_v15  ;;  %v107_v26 = vmul.f32 %v95_v1, %v91_v3  ;;  %v349_v32 = vld [vmem:[#allocation2 + $0x28] sm:$0xff]  ;;  %v355_v35 = vld [vmem:[#allocation5 + $0x30] sm:$0xff]  ;;  %v356_v36 = vld [vmem:[#allocation5 + $0x38] sm:$0xff]  ;;  %p4365_p4 = scmp.ne.s32.totalorder %s3234_s27, %s4364_s28  ;;  %p4370_p6 = scmp.lt.s32.totalorder %s4364_s28, %s4364_s28 }
  0x4e   :  { %v3880_v22 = vpack.c.bf16 %v106_v14, %v105_v13  ;;  %3877 = vmatprep.subr.bf16.mxu1 %v3876_v17  ;;  %3873 = vmatprep.subr.bf16.mxu0 %v3872_v20  ;;  %v108_v28 = vmul.f32 %v96_v2, %v92_v6  ;;  %v109_v29 = vmul.f32 %v97_v9, %v93_v15  ;;  %v4503_v40 = vld [vmem:[#allocation7] sm:$0xff]  ;;  %v350_v43 = vld [vmem:[#allocation2 + $0x30] sm:$0xff]  ;;  %v351_v44 = vld [vmem:[#allocation2 + $0x38] sm:$0xff]  ;;  %vm3213_vm3 = vcmask 1042434  }
  0x4f   :  { %3879 = vmatpush1.bf16.msra.mxu1 %v3878_v21  ;;  %v3882_v27 = vpack.c.bf16 %v102_v19, %v101_v18  ;;  %v3892_v30 = vpack.c.bf16 %v354_v25, %v353_v24  ;;  %v110_v33 = vmul.f32 %v98_v10, %v94_v16  ;;  %v361_v38 = vmul.f32 %v353_v24, %v353_v24  ;;  %v4511_v52 = vld [vmem:[#allocation7 + $0x8] sm:$0xff]  ;;  %v604_v60 = vld [vmem:[#allocation5 + $0x40] sm:$0xff]  ;;  %v606_v6 = vld [vmem:[#allocation5 + $0x50] sm:$0xff]  ;;  %p4371_p7 = por %p4370_p6, %p4369_p5 }
  0x50   :  { %3881 = vmatprep.subr.bf16.mxu1 %v3880_v22  ;;  %v3884_v34 = vpack.c.bf16 %v108_v28, %v107_v26  ;;  %v362_v39 = vmul.f32 %v354_v25, %v354_v25  ;;  %v3894_v41 = vpack.c.bf16 %v349_v32, %v348_v31  ;;  %v3896_v42 = vpack.c.bf16 %v356_v36, %v355_v35  ;;  %v605_v61 = vld [vmem:[#allocation5 + $0x48] sm:$0xff]  ;;  %v599_v3 = vld [vmem:[#allocation2 + $0x40] sm:$0xff]  ;;  %v607_v7 = vld [vmem:[#allocation5 + $0x58] sm:$0xff] }
  0x51   :  { %3875 = vmatpush1.bf16.msra.mxu0 %v3874_v23  ;;  %v3888_v37 = vpack.c.bf16 %v110_v33, %v109_v29  ;;  %v365_v45 = vmul.f32 %v353_v24, %v348_v31  ;;  %v366_v46 = vmul.f32 %v354_v25, %v349_v32  ;;  %v357_v47 = vmul.f32 %v348_v31, %v348_v31  ;;  %v600_v4 = vld [vmem:[#allocation2 + $0x48] sm:$0xff]  ;;  %v601_v14 = vld [vmem:[#allocation2 + $0x50] sm:$0xff]  ;;  %v602_v15 = vld [vmem:[#allocation2 + $0x58] sm:$0xff]  ;;  %p4372_p8 = pnand %p4371_p7, %p4365_p4 }
  0x52   :  { %3885 = vmatprep.subr.bf16.mxu0 %v3884_v34  ;;  %v358_v48 = vmul.f32 %v349_v32, %v349_v32  ;;  %v3900_v49 = vpack.c.bf16 %v362_v39, %v361_v38  ;;  %v363_v50 = vmul.f32 %v355_v35, %v355_v35  ;;  %v364_v51 = vmul.f32 %v356_v36, %v356_v36  ;;  %v855_v25 = vld [vmem:[#allocation5 + $0x60] sm:$0xff]  ;;  %v856_v26 = vld [vmem:[#allocation5 + $0x68] sm:$0xff] }
  0x53   :  { %3883 = vmatpush1.bf16.msra.mxu1 %v3882_v27  ;;  %v3898_v53 = vpack.c.bf16 %v351_v44, %v350_v43  ;;  %v3908_v54 = vpack.c.bf16 %v366_v46, %v365_v45  ;;  %v367_v55 = vmul.f32 %v355_v35, %v350_v43  ;;  %v368_v56 = vmul.f32 %v356_v36, %v351_v44  ;;  %v850_v32 = vld [vmem:[#allocation2 + $0x60] sm:$0xff]  ;;  %v851_v33 = vld [vmem:[#allocation2 + $0x68] sm:$0xff]  ;;  %v858_v35 = vld [vmem:[#allocation5 + $0x78] sm:$0xff] }
  0x54   :  { %3893 = vmatprep.subr.bf16.mxu1 %v3892_v30  ;;  %3244 = vmatmul.mubr.msk.f32.vlgmr.msra.gmra.mrb[0].mxu0 %vm111_vm0, %v4503_v40  ;;  %v3902_v57 = vpack.c.bf16 %v358_v48, %v357_v47  ;;  %v359_v58 = vmul.f32 %v350_v43, %v350_v43  ;;  %v360_v59 = vmul.f32 %v351_v44, %v351_v44  ;;  %v853_v43 = vld [vmem:[#allocation2 + $0x78] sm:$0xff]  ;;  %vm3215_vm4 = vcmask 1043459  }
  0x55   :  { %3887 = vmatpush3.bf16.msra.mxu0 %v3884_v34  ;;  %188 = vmatprep.mubr.f32.mxu0 %v4400_v0  ;;  %v3904_v62 = vpack.c.bf16 %v364_v51, %v363_v50  ;;  %v3912_v63 = vpack.c.bf16 %v368_v56, %v367_v55  ;;  %v612_v1 = vmul.f32 %v604_v60, %v604_v60  ;;  %v857_v34 = vld [vmem:[#allocation5 + $0x70] sm:$0xff]  ;;  %vm3217_vm5 = vcmask 1044484  }
  0x56   :  { %3246 = vmatmul.mubr.msk.f32.vlgmr.msra.gmra.mrb[0].mxu1 %vm111_vm0, %v4503_v40  ;;  %3889 = vmatprep.subr.bf16.mxu0 %v3888_v37  ;;  %v613_v2 = vmul.f32 %v605_v61, %v605_v61  ;;  %v3906_v5 = vpack.c.bf16 %v360_v59, %v359_v58  ;;  %v3916_v8 = vpack.c.bf16 %v605_v61, %v604_v60  ;;  %v1106_v59 = vld [vmem:[#allocation5 + $0x80] sm:$0xff]  ;;  %vm3219_vm6 = vcmask 1045509  }
  0x57   :  { %3895 = vmatpush1.bf16.msra.mxu1 %v3894_v41  ;;  %265 = vmatprep.mubr.f32.mxu1 %v4400_v0  ;;  %v608_v9 = vmul.f32 %v599_v3, %v599_v3  ;;  %v609_v10 = vmul.f32 %v600_v4, %v600_v4  ;;  %v614_v12 = vmul.f32 %v606_v6, %v606_v6  ;;  %vm3221_vm7 = vcmask 1046534  }
  0x58   :  { %3897 = vmatprep.subr.bf16.mxu1 %v3896_v42  ;;  %3245 = vmatmul.mubr.msk.f32.gmra.mrb[2].mxu0 %vm111_vm0, %v4511_v52  ;;  %v3924_v11 = vpack.c.bf16 %v613_v2, %v612_v1  ;;  %v615_v13 = vmul.f32 %v607_v7, %v607_v7  ;;  %v3918_v16 = vpack.c.bf16 %v600_v4, %v599_v3  ;;  %v852_v42 = vld [vmem:[#allocation2 + $0x70] sm:$0xff]  ;;  %v1101_v2 = vld [vmem:[#allocation2 + $0x80] sm:$0xff]  ;;  %vm3223_vm8 = vcmask 1047559  }
  0x59   :  { %3891 = vmatpush3.bf16.msra.mxu0 %v3888_v37  ;;  %3508 = vmatprep.mubr.msk.f32.mxu0 %vm111_vm0, %v4503_v40  ;;  %v3920_v17 = vpack.c.bf16 %v607_v7, %v606_v6  ;;  %v616_v18 = vmul.f32 %v604_v60, %v599_v3  ;;  %v617_v19 = vmul.f32 %v605_v61, %v600_v4  ;;  %v1107_v60 = vld [vmem:[#allocation5 + $0x88] sm:$0xff] }
  0x5a   :  { %3247 = vmatmul.mubr.msk.f32.gmra.mrb[2].mxu1 %vm111_vm0, %v4511_v52  ;;  %3901 = vmatprep.subr.bf16.mxu0 %v3900_v49  ;;  %v3926_v20 = vpack.c.bf16 %v609_v10, %v608_v9  ;;  %v610_v21 = vmul.f32 %v601_v14, %v601_v14  ;;  %v611_v22 = vmul.f32 %v602_v15, %v602_v15  ;;  %v1102_v3 = vld [vmem:[#allocation2 + $0x88] sm:$0xff] }
  0x5b   :  { %3899 = vmatpush1.bf16.msra.mxu1 %v3898_v53  ;;  %433 = vmatprep.mubr.f32.mxu1 %v4400_v0  ;;  %v3928_v23 = vpack.c.bf16 %v615_v13, %v614_v12  ;;  %v3922_v24 = vpack.c.bf16 %v602_v15, %v601_v14  ;;  %v3932_v27 = vpack.c.bf16 %v617_v19, %v616_v18  ;;  %v1103_v13 = vld [vmem:[#allocation2 + $0x90] sm:$0xff] }
  0x5c   :  { %3909 = vmatprep.subr.bf16.mxu1 %v3908_v54  ;;  %3509 = vmatmul.mubr.msk.f32.vlgmr.msra.gmra.mrb[4].mxu0 %vm111_vm0, %v4511_v52  ;;  %v618_v28 = vmul.f32 %v606_v6, %v601_v14  ;;  %v619_v29 = vmul.f32 %v607_v7, %v602_v15  ;;  %v3930_v30 = vpack.c.bf16 %v611_v22, %v610_v21  ;;  %v1109_v6 = vld [vmem:[#allocation5 + $0x98] sm:$0xff] }
  0x5d   :  { %3903 = vmatpush1.bf16.msra.mxu0 %v3902_v57  ;;  %510 = vmatprep.mubr.f32.mxu0 %v4400_v0  ;;  %v3940_v31 = vpack.c.bf16 %v856_v26, %v855_v25  ;;  %v863_v37 = vmul.f32 %v855_v25, %v855_v25  ;;  %v864_v38 = vmul.f32 %v856_v26, %v856_v26  ;;  %v1104_v14 = vld [vmem:[#allocation2 + $0x98] sm:$0xff] }
  0x5e   :  { %3250 = vmatmul.mubr.msk.f32.vlgmr.msra.gmra.mrb[4].mxu1 %vm111_vm0, %v4503_v40  ;;  %3905 = vmatprep.subr.bf16.mxu0 %v3904_v62  ;;  %v3936_v36 = vpack.c.bf16 %v619_v29, %v618_v28  ;;  %v3942_v39 = vpack.c.bf16 %v851_v33, %v850_v32  ;;  %v3944_v41 = vpack.c.bf16 %v858_v35, %v857_v34 }
  0x5f   :  { %3911 = vmatpush3.bf16.msra.mxu1 %v3908_v54  ;;  %439 = vmatprep.mubr.f32.mxu1 %v4400_v0  ;;  %v867_v44 = vmul.f32 %v855_v25, %v850_v32  ;;  %v868_v45 = vmul.f32 %v856_v26, %v851_v33  ;;  %v859_v46 = vmul.f32 %v850_v32, %v850_v32  ;;  %v1358_v25 = vld [vmem:[#allocation5 + $0xa8] sm:$0xff] }
  0x60   :  { %3913 = vmatprep.subr.bf16.mxu1 %v3912_v63  ;;  %v860_v47 = vmul.f32 %v851_v33, %v851_v33  ;;  %v3948_v48 = vpack.c.bf16 %v864_v38, %v863_v37  ;;  %v865_v49 = vmul.f32 %v857_v34, %v857_v34  ;;  %v866_v50 = vmul.f32 %v858_v35, %v858_v35  ;;  %v1353_v32 = vld [vmem:[#allocation2 + $0xa8] sm:$0xff]  ;;  %v1359_v33 = vld [vmem:[#allocation5 + $0xb0] sm:$0xff] }
  0x61   :  { %3907 = vmatpush1.bf16.msra.mxu0 %v3906_v5  ;;  %v3946_v51 = vpack.c.bf16 %v853_v43, %v852_v42  ;;  %v3956_v53 = vpack.c.bf16 %v868_v45, %v867_v44  ;;  %v869_v54 = vmul.f32 %v857_v34, %v852_v42  ;;  %v870_v55 = vmul.f32 %v858_v35, %v853_v43  ;;  %v1108_v5 = vld [vmem:[#allocation5 + $0x90] sm:$0xff]  ;;  %v1360_v34 = vld [vmem:[#allocation5 + $0xb8] sm:$0xff] }
  0x62   :  { %3251 = vmatmul.mubr.msk.f32.gmra.mrb[6].mxu1 %vm111_vm0, %v4511_v52  ;;  %3917 = vmatprep.subr.bf16.mxu0 %v3916_v8  ;;  %v3950_v56 = vpack.c.bf16 %v860_v47, %v859_v46  ;;  %v861_v57 = vmul.f32 %v852_v42, %v852_v42  ;;  %v862_v58 = vmul.f32 %v853_v43, %v853_v43  ;;  %v1355_v42 = vld [vmem:[#allocation2 + $0xb8] sm:$0xff] }
  0x63   :  { %3915 = vmatpush3.bf16.msra.mxu1 %v3912_v63  ;;  %3519 = vmatprep.mubr.msk.f32.mxu1 %vm111_vm0, %v4503_v40  ;;  %v3952_v61 = vpack.c.bf16 %v866_v50, %v865_v49  ;;  %v3960_v62 = vpack.c.bf16 %v870_v55, %v869_v54  ;;  %v1114_v63 = vmul.f32 %v1106_v59, %v1106_v59 }
  0x64   :  { %3925 = vmatprep.subr.bf16.mxu1 %v3924_v11  ;;  %3252 = vmatmul.mubr.msk.f32.vlgmr.msra.gmra.mrb[6].mxu0 %vm111_vm0, %v4503_v40  ;;  %v1115_v1 = vmul.f32 %v1107_v60, %v1107_v60  ;;  %v3954_v4 = vpack.c.bf16 %v862_v58, %v861_v57  ;;  %v3964_v7 = vpack.c.bf16 %v1107_v60, %v1106_v59  ;;  %v1608_v58 = vld [vmem:[#allocation5 + $0xc0] sm:$0xff] }
  0x65   :  { %3919 = vmatpush1.bf16.msra.mxu0 %v3918_v16  ;;  %516 = vmatprep.mubr.f32.mxu0 %v4400_v0  ;;  %v1110_v8 = vmul.f32 %v1101_v2, %v1101_v2  ;;  %v1111_v9 = vmul.f32 %v1102_v3, %v1102_v3  ;;  %v1116_v11 = vmul.f32 %v1108_v5, %v1108_v5 }
  0x66   :  { %3520 = vmatmul.mubr.msk.f32.vlgmr.msra.gmra.mrb[8].mxu1 %vm111_vm0, %v4511_v52  ;;  %3921 = vmatprep.subr.bf16.mxu0 %v3920_v17  ;;  %v3972_v10 = vpack.c.bf16 %v1115_v1, %v1114_v63  ;;  %v1117_v12 = vmul.f32 %v1109_v6, %v1109_v6  ;;  %v3966_v15 = vpack.c.bf16 %v1102_v3, %v1101_v2  ;;  %v1603_v1 = vld [vmem:[#allocation2 + $0xc0] sm:$0xff] }
  0x67   :  { %3927 = vmatpush1.bf16.msra.mxu1 %v3926_v20  ;;  %761 = vmatprep.mubr.f32.mxu1 %v4400_v0  ;;  %v3968_v16 = vpack.c.bf16 %v1109_v6, %v1108_v5  ;;  %v1118_v17 = vmul.f32 %v1106_v59, %v1101_v2  ;;  %v1119_v18 = vmul.f32 %v1107_v60, %v1102_v3  ;;  %v1609_v59 = vld [vmem:[#allocation5 + $0xc8] sm:$0xff] }
  0x68   :  { %3929 = vmatprep.subr.bf16.mxu1 %v3928_v23  ;;  %3253 = vmatmul.mubr.msk.f32.gmra.mrb[8].mxu0 %vm111_vm0, %v4511_v52  ;;  %v3974_v19 = vpack.c.bf16 %v1111_v9, %v1110_v8  ;;  %v1112_v20 = vmul.f32 %v1103_v13, %v1103_v13  ;;  %v1113_v21 = vmul.f32 %v1104_v14, %v1104_v14  ;;  %v1604_v2 = vld [vmem:[#allocation2 + $0xc8] sm:$0xff] }
  0x69   :  { %3923 = vmatpush1.bf16.msra.mxu0 %v3922_v24  ;;  %684 = vmatprep.mubr.f32.mxu0 %v4400_v0  ;;  %v3976_v22 = vpack.c.bf16 %v1117_v12, %v1116_v11  ;;  %v3970_v23 = vpack.c.bf16 %v1104_v14, %v1103_v13  ;;  %v1357_v24 = vld [vmem:[#allocation5 + $0xa0] sm:$0xff]  ;;  %v3980_v26 = vpack.c.bf16 %v1119_v18, %v1118_v17  ;;  %v1605_v12 = vld [vmem:[#allocation2 + $0xd0] sm:$0xff] }
  0x6a   :  { %3933 = vmatprep.subr.bf16.mxu0 %v3932_v27  ;;  %v1121_v28 = vmul.f32 %v1109_v6, %v1104_v14  ;;  %v3978_v29 = vpack.c.bf16 %v1113_v21, %v1112_v20  ;;  %v1366_v37 = vmul.f32 %v1358_v25, %v1358_v25  ;;  %v1370_v44 = vmul.f32 %v1358_v25, %v1353_v32 }
  0x6b   :  { %3931 = vmatpush1.bf16.msra.mxu1 %v3930_v30  ;;  %v3988_v30 = vpack.c.bf16 %v1358_v25, %v1357_v24  ;;  %v1362_v46 = vmul.f32 %v1353_v32, %v1353_v32  ;;  %v1368_v49 = vmul.f32 %v1360_v34, %v1360_v34  ;;  %v1372_v54 = vmul.f32 %v1360_v34, %v1355_v42 }
  0x6c   :  { %3941 = vmatprep.subr.bf16.mxu1 %v3940_v31  ;;  %3256 = vmatmul.mubr.msk.f32.vlgmr.msra.gmra.mrb[10].mxu0 %vm111_vm0, %v4503_v40  ;;  %v1352_v31 = vld [vmem:[#allocation2 + $0xa0] sm:$0xff]  ;;  %v1364_v57 = vmul.f32 %v1355_v42, %v1355_v42  ;;  %v1617_v63 = vmul.f32 %v1609_v59, %v1609_v59  ;;  %v4012_v6 = vpack.c.bf16 %v1609_v59, %v1608_v58 }
  0x6d   :  { %3935 = vmatpush3.bf16.msra.mxu0 %v3932_v27  ;;  %690 = vmatprep.mubr.f32.mxu0 %v4400_v0  ;;  %v1120_v27 = vmul.f32 %v1108_v5, %v1103_v13  ;;  %v3990_v38 = vpack.c.bf16 %v1353_v32, %v1352_v31  ;;  %v1369_v43 = vmul.f32 %v1357_v24, %v1352_v31  ;;  %v1611_v5 = vld [vmem:[#allocation5 + $0xd8] sm:$0xff]  ;;  %v1861_v32 = vld [vmem:[#allocation5 + $0xf0] sm:$0xff] }
  0x6e   :  { %3258 = vmatmul.mubr.msk.f32.vlgmr.msra.gmra.mrb[10].mxu1 %vm111_vm0, %v4503_v40  ;;  %3937 = vmatprep.subr.bf16.mxu0 %v3936_v36  ;;  %v1361_v45 = vmul.f32 %v1352_v31, %v1352_v31  ;;  %v1613_v8 = vmul.f32 %v1604_v2, %v1604_v2  ;;  %v1619_v11 = vmul.f32 %v1611_v5, %v1611_v5  ;;  %v1606_v13 = vld [vmem:[#allocation2 + $0xd8] sm:$0xff]  ;;  %v1855_v31 = vld [vmem:[#allocation2 + $0xe8] sm:$0xff] }
  0x6f   :  { %3943 = vmatpush1.bf16.msra.mxu1 %v3942_v39  ;;  %767 = vmatprep.mubr.f32.mxu1 %v4400_v0  ;;  %v3984_v35 = vpack.c.bf16 %v1121_v28, %v1120_v27  ;;  %v3992_v39 = vpack.c.bf16 %v1360_v34, %v1359_v33  ;;  %v4014_v14 = vpack.c.bf16 %v1604_v2, %v1603_v1 }
  0x70   :  { %3945 = vmatprep.subr.bf16.mxu1 %v3944_v41  ;;  %3257 = vmatmul.mubr.msk.f32.gmra.mrb[12].mxu0 %vm111_vm0, %v4511_v52  ;;  %v1354_v41 = vld [vmem:[#allocation2 + $0xb0] sm:$0xff]  ;;  %v3998_v55 = vpack.c.bf16 %v1362_v46, %v1361_v45  ;;  %v1621_v17 = vmul.f32 %v1609_v59, %v1604_v2  ;;  %v1615_v20 = vmul.f32 %v1606_v13, %v1606_v13  ;;  %v76_v59 = vld [vmem:[#allocation8 + $0x8] sm:$0xff] }
  0x71   :  { %3939 = vmatpush3.bf16.msra.mxu0 %v3936_v36  ;;  %3530 = vmatprep.mubr.msk.f32.mxu0 %vm111_vm0, %v4503_v40  ;;  %v1365_v36 = vmul.f32 %v1357_v24, %v1357_v24  ;;  %v3994_v50 = vpack.c.bf16 %v1355_v42, %v1354_v41  ;;  %v1860_v24 = vld [vmem:[#allocation5 + $0xe8] sm:$0xff]  ;;  %v1623_v27 = vmul.f32 %v1611_v5, %v1606_v13 }
  0x72   :  { %3259 = vmatmul.mubr.msk.f32.gmra.mrb[12].mxu1 %vm111_vm0, %v4511_v52  ;;  %3949 = vmatprep.subr.bf16.mxu0 %v3948_v48  ;;  %v1367_v48 = vmul.f32 %v1359_v33, %v1359_v33  ;;  %v1864_v45 = vmul.f32 %v1855_v31, %v1855_v31 }
  0x73   :  { %3947 = vmatpush1.bf16.msra.mxu1 %v3946_v51  ;;  %935 = vmatprep.mubr.f32.mxu1 %v4400_v0  ;;  %v3996_v47 = vpack.c.bf16 %v1366_v37, %v1365_v36  ;;  %v4004_v51 = vpack.c.bf16 %v1370_v44, %v1369_v43  ;;  %v1868_v36 = vmul.f32 %v1860_v24, %v1860_v24 }
  0x74   :  { %3957 = vmatprep.subr.bf16.mxu1 %v3956_v53  ;;  %3531 = vmatmul.mubr.msk.f32.vlgmr.msra.gmra.mrb[14].mxu0 %vm111_vm0, %v4511_v52  ;;  %v4000_v60 = vpack.c.bf16 %v1368_v49, %v1367_v48  ;;  %v1872_v43 = vmul.f32 %v1860_v24, %v1855_v31 }
  0x75   :  { %3951 = vmatpush1.bf16.msra.mxu0 %v3950_v56  ;;  %1012 = vmatprep.mubr.f32.mxu0 %v4400_v0  ;;  %v1363_v56 = vmul.f32 %v1354_v41, %v1354_v41 }
  0x76   :  { %3262 = vmatmul.mubr.msk.f32.vlgmr.msra.gmra.mrb[14].mxu1 %vm111_vm0, %v4503_v40  ;;  %3953 = vmatprep.subr.bf16.mxu0 %v3952_v61 }
  0x77   :  { %3959 = vmatpush3.bf16.msra.mxu1 %v3956_v53  ;;  %941 = vmatprep.mubr.f32.mxu1 %v4400_v0  ;;  %v1371_v53 = vmul.f32 %v1359_v33, %v1354_v41  ;;  %v4002_v3 = vpack.c.bf16 %v1364_v57, %v1363_v56  ;;  %v1862_v33 = vld [vmem:[#allocation5 + $0xf8] sm:$0xff] }
  0x78   :  { %3961 = vmatprep.subr.bf16.mxu1 %v3960_v62  ;;  %v1857_v41 = vld [vmem:[#allocation2 + $0xf8] sm:$0xff]  ;;  %v1870_v48 = vmul.f32 %v1862_v33, %v1862_v33 }
  0x79   :  { %3955 = vmatpush1.bf16.msra.mxu0 %v3954_v4  ;;  %v4008_v61 = vpack.c.bf16 %v1372_v54, %v1371_v53  ;;  %v1610_v4 = vld [vmem:[#allocation5 + $0xd0] sm:$0xff]  ;;  %v1874_v53 = vmul.f32 %v1862_v33, %v1857_v41  ;;  %v1866_v56 = vmul.f32 %v1857_v41, %v1857_v41 }
  0x7a   :  { %3263 = vmatmul.mubr.msk.f32.gmra.mrb[16].mxu1 %vm111_vm0, %v4511_v52  ;;  %3965 = vmatprep.subr.bf16.mxu0 %v3964_v7  ;;  %v1612_v7 = vmul.f32 %v1603_v1, %v1603_v1 }
  0x7b   :  { %3963 = vmatpush3.bf16.msra.mxu1 %v3960_v62  ;;  %3541 = vmatprep.mubr.msk.f32.mxu1 %vm111_vm0, %v4503_v40  ;;  %v1616_v62 = vmul.f32 %v1608_v58, %v1608_v58 }
  0x7c   :  { %3973 = vmatprep.subr.bf16.mxu1 %v3972_v10  ;;  %3264 = vmatmul.mubr.msk.f32.vlgmr.msra.gmra.mrb[16].mxu0 %vm111_vm0, %v4503_v40  ;;  %v1618_v10 = vmul.f32 %v1610_v4, %v1610_v4  ;;  %v4022_v18 = vpack.c.bf16 %v1613_v8, %v1612_v7  ;;  %v82_v7 = vld [vmem:[#allocation8 + $0x38] sm:$0xff]  ;;  %v84_v8 = vld [vmem:[#allocation8 + $0x48] sm:$0xff] }
  0x7d   :  { %3967 = vmatpush1.bf16.msra.mxu0 %v3966_v15  ;;  %1018 = vmatprep.mubr.f32.mxu0 %v4400_v0  ;;  %v4020_v9 = vpack.c.bf16 %v1617_v63, %v1616_v62  ;;  %v4016_v15 = vpack.c.bf16 %v1611_v5, %v1610_v4  ;;  %v77_v63 = vld [vmem:[#allocation8 + $0x10] sm:$0xff] }
  0x7e   :  { %3542 = vmatmul.mubr.msk.f32.vlgmr.msra.gmra.mrb[18].mxu1 %vm111_vm0, %v4511_v52  ;;  %3969 = vmatprep.subr.bf16.mxu0 %v3968_v16  ;;  %v1620_v16 = vmul.f32 %v1608_v58, %v1603_v1  ;;  %v4024_v21 = vpack.c.bf16 %v1619_v11, %v1618_v10  ;;  %v75_v58 = vld [vmem:[#allocation8] sm:$0xff]  ;;  %v78_v1 = vld [vmem:[#allocation8 + $0x18] sm:$0xff] }
  0x7f   :  { %3975 = vmatpush1.bf16.msra.mxu1 %v3974_v19  ;;  %1263 = vmatprep.mubr.f32.mxu1 %v4400_v0  ;;  %v1614_v19 = vmul.f32 %v1605_v12, %v1605_v12  ;;  %v4621_v62 = vpack.c.bf16 %v76_v59, %v75_v58  ;;  %v4627_v2 = vpack.c.bf16 %v78_v1, %v77_v63  ;;  %v86_v10 = vld [vmem:[#allocation8 + $0x58] sm:$0xff] }
  0x80   :  { %3977 = vmatprep.subr.bf16.mxu1 %v3976_v22  ;;  %3265 = vmatmul.mubr.msk.f32.gmra.mrb[18].mxu0 %vm111_vm0, %v4511_v52  ;;  %v4018_v22 = vpack.c.bf16 %v1606_v13, %v1605_v12  ;;  %v4028_v25 = vpack.c.bf16 %v1621_v17, %v1620_v16  ;;  %v88_v13 = vld [vmem:[#allocation8 + $0x68] sm:$0xff]  ;;  %v90_v16 = vld [vmem:[#allocation8 + $0x78] sm:$0xff] }
  0x81   :  { %3971 = vmatpush1.bf16.msra.mxu0 %v3970_v23  ;;  %1186 = vmatprep.mubr.f32.mxu0 %v4400_v0  ;;  %v1859_v23 = vld [vmem:[#allocation5 + $0xe0] sm:$0xff]  ;;  %v4026_v28 = vpack.c.bf16 %v1615_v20, %v1614_v19 }
  0x82   :  { %3981 = vmatprep.subr.bf16.mxu0 %v3980_v26 }
  0x83   :  { %3979 = vmatpush1.bf16.msra.mxu1 %v3978_v29  ;;  %v4036_v29 = vpack.c.bf16 %v1860_v24, %v1859_v23 }
  0x84   :  { %3989 = vmatprep.subr.bf16.mxu1 %v3988_v30  ;;  %3268 = vmatmul.mubr.msk.f32.vlgmr.msra.gmra.mrb[20].mxu0 %vm111_vm0, %v4503_v40  ;;  %v1854_v30 = vld [vmem:[#allocation2 + $0xe0] sm:$0xff] }
  0x85   :  { %3983 = vmatpush3.bf16.msra.mxu0 %v3980_v26  ;;  %1192 = vmatprep.mubr.f32.mxu0 %v4400_v0  ;;  %v1622_v26 = vmul.f32 %v1610_v4, %v1605_v12  ;;  %v4038_v37 = vpack.c.bf16 %v1855_v31, %v1854_v30  ;;  %v1871_v42 = vmul.f32 %v1859_v23, %v1854_v30  ;;  %v80_v4 = vld [vmem:[#allocation8 + $0x28] sm:$0xff]  ;;  %v87_v12 = vld [vmem:[#allocation8 + $0x60] sm:$0xff] }
  0x86   :  { %3270 = vmatmul.mubr.msk.f32.vlgmr.msra.gmra.mrb[20].mxu1 %vm111_vm0, %v4503_v40  ;;  %3985 = vmatprep.subr.bf16.mxu0 %v3984_v35  ;;  %v1863_v44 = vmul.f32 %v1854_v30, %v1854_v30 }
  0x87   :  { %3991 = vmatpush1.bf16.msra.mxu1 %v3990_v38  ;;  %1269 = vmatprep.mubr.f32.mxu1 %v4400_v0  ;;  %v4032_v34 = vpack.c.bf16 %v1623_v27, %v1622_v26  ;;  %v4040_v38 = vpack.c.bf16 %v1862_v33, %v1861_v32 }
  0x88   :  { %3993 = vmatprep.subr.bf16.mxu1 %v3992_v39  ;;  %3269 = vmatmul.mubr.msk.f32.gmra.mrb[22].mxu0 %vm111_vm0, %v4511_v52  ;;  %v1856_v39 = vld [vmem:[#allocation2 + $0xf0] sm:$0xff]  ;;  %v4046_v54 = vpack.c.bf16 %v1864_v45, %v1863_v44 }
  0x89   :  { %3987 = vmatpush3.bf16.msra.mxu0 %v3984_v35  ;;  %3552 = vmatprep.mubr.msk.f32.mxu0 %vm111_vm0, %v4503_v40  ;;  %v1867_v35 = vmul.f32 %v1859_v23, %v1859_v23  ;;  %v4042_v49 = vpack.c.bf16 %v1857_v41, %v1856_v39 }
  0x8a   :  { %3271 = vmatmul.mubr.msk.f32.gmra.mrb[22].mxu1 %vm111_vm0, %v4511_v52  ;;  %3997 = vmatprep.subr.bf16.mxu0 %v3996_v47  ;;  %v1869_v47 = vmul.f32 %v1861_v32, %v1861_v32 }
  0x8b   :  { %3995 = vmatpush1.bf16.msra.mxu1 %v3994_v50  ;;  %1437 = vmatprep.mubr.f32.mxu1 %v4400_v0  ;;  %v4044_v46 = vpack.c.bf16 %v1868_v36, %v1867_v35  ;;  %v4052_v50 = vpack.c.bf16 %v1872_v43, %v1871_v42 }
  0x8c   :  { %4005 = vmatprep.subr.bf16.mxu1 %v4004_v51  ;;  %3553 = vmatmul.mubr.msk.f32.vlgmr.msra.gmra.mrb[24].mxu0 %vm111_vm0, %v4511_v52  ;;  %v4048_v57 = vpack.c.bf16 %v1870_v48, %v1869_v47 }
  0x8d   :  { %3999 = vmatpush1.bf16.msra.mxu0 %v3998_v55  ;;  %1514 = vmatprep.mubr.f32.mxu0 %v4400_v0  ;;  %v1865_v55 = vmul.f32 %v1856_v39, %v1856_v39 }
  0x8e   :  { %3274 = vmatmul.mubr.msk.f32.vlgmr.msra.gmra.mrb[24].mxu1 %vm111_vm0, %v4503_v40  ;;  %4001 = vmatprep.subr.bf16.mxu0 %v4000_v60 }
  0x8f   :  { %4007 = vmatpush3.bf16.msra.mxu1 %v4004_v51  ;;  %1443 = vmatprep.mubr.f32.mxu1 %v4400_v0  ;;  %v1873_v51 = vmul.f32 %v1861_v32, %v1856_v39 }
  0x90   :  { %4009 = vmatprep.subr.bf16.mxu1 %v4008_v61 }
  0x91   :  { %4003 = vmatpush1.bf16.msra.mxu0 %v4002_v3  ;;  %v4056_v60 = vpack.c.bf16 %v1874_v53, %v1873_v51  ;;  %v79_v3 = vld [vmem:[#allocation8 + $0x20] sm:$0xff] }
  0x92   :  { %3275 = vmatmul.mubr.msk.f32.gmra.mrb[26].mxu1 %vm111_vm0, %v4511_v52  ;;  %4013 = vmatprep.subr.bf16.mxu0 %v4012_v6  ;;  %v4639_v5 = vpack.c.bf16 %v80_v4, %v79_v3  ;;  %v81_v6 = vld [vmem:[#allocation8 + $0x30] sm:$0xff] }
  0x93   :  { %4011 = vmatpush3.bf16.msra.mxu1 %v4008_v61  ;;  %3563 = vmatprep.mubr.msk.f32.mxu1 %vm111_vm0, %v4503_v40  ;;  %v4050_v61 = vpack.c.bf16 %v1866_v56, %v1865_v55 }
  0x94   :  { %4021 = vmatprep.subr.bf16.mxu1 %v4020_v9  ;;  %3276 = vmatmul.mubr.msk.f32.vlgmr.msra.gmra.mrb[26].mxu0 %vm111_vm0, %v4503_v40 }
  0x95   :  { %4015 = vmatpush1.bf16.msra.mxu0 %v4014_v14  ;;  %1520 = vmatprep.mubr.f32.mxu0 %v4400_v0  ;;  %v4665_v14 = vpack.c.bf16 %v88_v13, %v87_v12 }
  0x96   :  { %3564 = vmatmul.mubr.msk.f32.vlgmr.msra.gmra.mrb[28].mxu1 %vm111_vm0, %v4511_v52  ;;  %4017 = vmatprep.subr.bf16.mxu0 %v4016_v15  ;;  %v89_v15 = vld [vmem:[#allocation8 + $0x70] sm:$0xff] }
  0x97   :  { %4023 = vmatpush1.bf16.msra.mxu1 %v4022_v18  ;;  %1765 = vmatprep.mubr.f32.mxu1 %v4400_v0  ;;  %v4671_v17 = vpack.c.bf16 %v90_v16, %v89_v15 }
  0x98   :  { %4025 = vmatprep.subr.bf16.mxu1 %v4024_v21  ;;  %3277 = vmatmul.mubr.msk.f32.gmra.mrb[28].mxu0 %vm111_vm0, %v4511_v52 }
  0x99   :  { %4019 = vmatpush1.bf16.msra.mxu0 %v4018_v22  ;;  %1688 = vmatprep.mubr.f32.mxu0 %v4400_v0 }
  0x9a   :  { %4029 = vmatprep.subr.bf16.mxu0 %v4028_v25 }
  0x9b   :  { %4027 = vmatpush1.bf16.msra.mxu1 %v4026_v28 }
  0x9c   :  { %4037 = vmatprep.subr.bf16.mxu1 %v4036_v29  ;;  %3280 = vmatmul.mubr.msk.f32.vlgmr.msra.gmra.mrb[30].mxu0 %vm111_vm0, %v4503_v40 }
  0x9d   :  { %1694 = vmatprep.mubr.f32.mxu0 %v4400_v0  ;;  %4031 = vmatpush3.bf16.msra.mxu0 %v4028_v25 }
  0x9e   :  { %3282 = vmatmul.mubr.msk.f32.vlgmr.msra.gmra.mrb[30].mxu1 %vm111_vm0, %v4503_v40  ;;  %4033 = vmatprep.subr.bf16.mxu0 %v4032_v34 }
  0x9f   :  { %4039 = vmatpush1.bf16.msra.mxu1 %v4038_v37  ;;  %1771 = vmatprep.mubr.f32.mxu1 %v4400_v0 }
  0xa0   :  { %4041 = vmatprep.subr.bf16.mxu1 %v4040_v38  ;;  %3281 = vmatmul.mubr.msk.f32.gmra.mrb[32].mxu0 %vm111_vm0, %v4511_v52 }
  0xa1   :  { %4035 = vmatpush3.bf16.msra.mxu0 %v4032_v34  ;;  %3574 = vmatprep.mubr.msk.f32.mxu0 %vm111_vm0, %v4503_v40 }
  0xa2   :  { %3283 = vmatmul.mubr.msk.f32.gmra.mrb[32].mxu1 %vm111_vm0, %v4511_v52  ;;  %4045 = vmatprep.subr.bf16.mxu0 %v4044_v46 }
  0xa3   :  { %4043 = vmatpush1.bf16.msra.mxu1 %v4042_v49  ;;  %1939 = vmatprep.mubr.f32.mxu1 %v4400_v0 }
  0xa4   :  { %3575 = vmatmul.mubr.msk.f32.vlgmr.msra.gmra.mrb[34].mxu0 %vm111_vm0, %v4511_v52  ;;  %4053 = vmatprep.subr.bf16.mxu1 %v4052_v50 }
  0xa5   :  { %4047 = vmatpush1.bf16.msra.mxu0 %v4046_v54  ;;  %2016 = vmatprep.mubr.f32.mxu0 %v4400_v0 }
  0xa6   :  { %3286 = vmatmul.mubr.msk.f32.vlgmr.msra.gmra.mrb[34].mxu1 %vm111_vm0, %v4503_v40  ;;  %4049 = vmatprep.subr.bf16.mxu0 %v4048_v57 }
  0xa7   :  { %1945 = vmatprep.mubr.f32.mxu1 %v4400_v0  ;;  %4055 = vmatpush3.bf16.msra.mxu1 %v4052_v50 }
  0xa8   :  { %4057 = vmatprep.subr.bf16.mxu1 %v4056_v60 }
  0xa9   :  { %4051 = vmatpush1.bf16.msra.mxu0 %v4050_v61 }
  0xaa   :  { %3287 = vmatmul.mubr.msk.f32.gmra.mrb[36].mxu1 %vm111_vm0, %v4511_v52  ;;  %4061 = vmatprep.subr.bf16.mxu0 %v4621_v62 }
  0xab   :  { %4059 = vmatpush3.bf16.msra.mxu1 %v4056_v60  ;;  %3585 = vmatprep.mubr.msk.f32.mxu1 %vm111_vm0, %v4503_v40 }
  0xac   :  { %3288 = vmatmul.mubr.msk.f32.vlgmr.msra.gmra.mrb[36].mxu0 %vm111_vm0, %v4503_v40  ;;  %4093 = vmatprep.subr.bf16.mxu1 %v4621_v62  ;;  %v83_v40 = vld [vmem:[#allocation8 + $0x40] sm:$0xff] }
  0xad   :  { %2022 = vmatprep.mubr.f32.mxu0 %v4400_v0  ;;  %4063 = vmatpush3.bf16.msra.mxu0 %v4621_v62  ;;  %v4647_v0 = vpack.c.bf16 %v82_v7, %v81_v6  ;;  %v4653_v9 = vpack.c.bf16 %v84_v8, %v83_v40 }
  0xae   :  { %3586 = vmatmul.mubr.msk.f32.vlgmr.msra.gmra.mrb[38].mxu1 %vm111_vm0, %v4511_v52  ;;  %4065 = vmatprep.subr.bf16.mxu0 %v4627_v2 }
  0xaf   :  { %4095 = vmatpush3.bf16.msra.mxu1 %v4621_v62 }
  0xb0   :  { %3289 = vmatmul.mubr.msk.f32.gmra.mrb[38].mxu0 %vm111_vm0, %v4511_v52  ;;  %4097 = vmatprep.subr.bf16.mxu1 %v4627_v2  ;;  %v85_v52 = vld [vmem:[#allocation8 + $0x50] sm:$0xff] }
  0xb1   :  { %4067 = vmatpush3.bf16.msra.mxu0 %v4627_v2  ;;  %v4659_v11 = vpack.c.bf16 %v86_v10, %v85_v52 }
  0xb2   :  { %4069 = vmatprep.subr.bf16.mxu0 %v4639_v5 }
  0xb3   :  { %4099 = vmatpush3.bf16.msra.mxu1 %v4627_v2 }
  0xb4   :  { %4101 = vmatprep.subr.bf16.mxu1 %v4639_v5 }
  0xb5   :  { %4071 = vmatpush3.bf16.msra.mxu0 %v4639_v5 }
  0xb6   :  { %4073 = vmatprep.subr.bf16.mxu0 %v4647_v0 }
  0xb7   :  { %4103 = vmatpush3.bf16.msra.mxu1 %v4639_v5 }
  0xb8   :  { %4105 = vmatprep.subr.bf16.mxu1 %v4647_v0 }
  0xb9   :  { %4075 = vmatpush3.bf16.msra.mxu0 %v4647_v0 }
  0xba   :  { %4077 = vmatprep.subr.bf16.mxu0 %v4653_v9 }
  0xbb   :  { %4107 = vmatpush3.bf16.msra.mxu1 %v4647_v0 }
  0xbc   :  { %4109 = vmatprep.subr.bf16.mxu1 %v4653_v9 }
  0xbd   :  { %4079 = vmatpush3.bf16.msra.mxu0 %v4653_v9 }
  0xbe   :  { %4081 = vmatprep.subr.bf16.mxu0 %v4659_v11 }
  0xbf   :  { %4111 = vmatpush3.bf16.msra.mxu1 %v4653_v9 }
  0xc0   :  { %4113 = vmatprep.subr.bf16.mxu1 %v4659_v11 }
  0xc1   :  { %4083 = vmatpush3.bf16.msra.mxu0 %v4659_v11 }
  0xc2   :  { %4085 = vmatprep.subr.bf16.mxu0 %v4665_v14 }
  0xc3   :  { %4115 = vmatpush3.bf16.msra.mxu1 %v4659_v11 }
  0xc4   :  { %4117 = vmatprep.subr.bf16.mxu1 %v4665_v14 }
  0xc5   :  { %4087 = vmatpush3.bf16.msra.mxu0 %v4665_v14 }
  0xc6   :  { %4089 = vmatprep.subr.bf16.mxu0 %v4671_v17 }
  0xc7   :  { %4119 = vmatpush3.bf16.msra.mxu1 %v4665_v14 }
  0xc8   :  { %4121 = vmatprep.subr.bf16.mxu1 %v4671_v17 }
  0xc9   :  { %4091 = vmatpush3.bf16.msra.mxu0 %v4671_v17 }
  0xca   :  { %4125 = vmatprep.subr.bf16.mxu0 %v4621_v62 }
  0xcb   :  { %4123 = vmatpush3.bf16.msra.mxu1 %v4671_v17 }
  0xcc   :  { %4157 = vmatprep.subr.bf16.mxu1 %v4621_v62 }
 0x127   :  { %v184_v18 = vpop.f32.mrb[0].mxu0 }
 0x128   :  { %v186_v19 = vpop.f32.mrb[1].mxu0  ;;  %3620 = vmatprep.mubr.f32.mxu0 %v184_v18 }
 0x129   :  { %v4683_v20 = vpop.f32.mrb[0].mxu1  ;;  %3676 = vmatprep.mubr.f32.mxu1 %v186_v19 }
 0x12a   :  { %v4685_v21 = vpop.f32.mrb[1].mxu1 }
 0x12b   :  { %v190_v22 = vpop.f32.mrb[2].mxu0 }
 0x12c   :  { %v192_v23 = vpop.f32.mrb[3].mxu0  ;;  %3621 = vmatmul.mubr.f32.vlgmr.msra.gmra.mrb[40].mxu0 %v190_v22 }
 0x12d   :  { %v4687_v24 = vpop.f32.mrb[2].mxu1  ;;  %3677 = vmatmul.mubr.f32.vlgmr.msra.gmra.mrb[40].mxu1 %v192_v23  ;;  %4127 = vmatpush3.bf16.msra.mxu0 %v4621_v62 }
 0x12e   :  { %v4690_v25 = vpop.f32.mrb[3].mxu1  ;;  %4159 = vmatpush3.bf16.msra.mxu1 %v4621_v62  ;;  %4129 = vmatprep.subr.bf16.mxu0 %v4627_v2 }
 0x12f   :  { %v4694_v26 = vpop.f32.mrb[4].mxu0  ;;  %4161 = vmatprep.subr.bf16.mxu1 %v4627_v2 }
 0x130   :  { %v4697_v27 = vpop.f32.mrb[5].mxu0 }
 0x131   :  { %v435_v28 = vpop.f32.mrb[4].mxu1  ;;  %4131 = vmatpush3.bf16.msra.mxu0 %v4627_v2 }
 0x132   :  { %v437_v29 = vpop.f32.mrb[5].mxu1  ;;  %3623 = vmatprep.mubr.f32.mxu0 %v435_v28  ;;  %4163 = vmatpush3.bf16.msra.mxu1 %v4627_v2 }
 0x133   :  { %3679 = vmatprep.mubr.f32.mxu1 %v437_v29  ;;  %4133 = vmatprep.subr.bf16.mxu0 %v4639_v5 }
 0x134   :  { %4165 = vmatprep.subr.bf16.mxu1 %v4639_v5 }
 0x135   :  { %v441_v30 = vpop.f32.mrb[6].mxu1  ;;  %4135 = vmatpush3.bf16.msra.mxu0 %v4639_v5 }
 0x136   :  { %v443_v31 = vpop.f32.mrb[7].mxu1  ;;  %3624 = vmatmul.mubr.f32.gmra.mrb[42].mxu0 %v441_v30  ;;  %4167 = vmatpush3.bf16.msra.mxu1 %v4639_v5 }
 0x137   :  { %3680 = vmatmul.mubr.f32.gmra.mrb[42].mxu1 %v443_v31  ;;  %v4705_v32 = vpop.f32.mrb[6].mxu0  ;;  %4137 = vmatprep.subr.bf16.mxu0 %v4647_v0 }
 0x138   :  { %v4708_v33 = vpop.f32.mrb[7].mxu0  ;;  %4169 = vmatprep.subr.bf16.mxu1 %v4647_v0 }
 0x139   :  { %v4711_v34 = vpop.f32.mrb[8].mxu1  ;;  %4139 = vmatpush3.bf16.msra.mxu0 %v4647_v0 }
 0x13a   :  { %v4714_v35 = vpop.f32.mrb[9].mxu1  ;;  %4171 = vmatpush3.bf16.msra.mxu1 %v4647_v0  ;;  %4141 = vmatprep.subr.bf16.mxu0 %v4653_v9 }
 0x13b   :  { %v4718_v36 = vpop.f32.mrb[8].mxu0  ;;  %4173 = vmatprep.subr.bf16.mxu1 %v4653_v9 }
 0x13c   :  { %v4721_v37 = vpop.f32.mrb[9].mxu0 }
 0x13d   :  { %4143 = vmatpush3.bf16.msra.mxu0 %v4653_v9 }
 0x13e   :  { %4175 = vmatpush3.bf16.msra.mxu1 %v4653_v9  ;;  %4145 = vmatprep.subr.bf16.mxu0 %v4659_v11 }
 0x13f   :  { %v686_v38 = vpop.f32.mrb[10].mxu0  ;;  %4177 = vmatprep.subr.bf16.mxu1 %v4659_v11 }
 0x140   :  { %v688_v39 = vpop.f32.mrb[11].mxu0  ;;  %3626 = vmatprep.mubr.f32.mxu0 %v686_v38 }
 0x141   :  { %v4727_v41 = vpop.f32.mrb[10].mxu1  ;;  %3682 = vmatprep.mubr.f32.mxu1 %v688_v39  ;;  %4147 = vmatpush3.bf16.msra.mxu0 %v4659_v11 }
 0x142   :  { %v4730_v42 = vpop.f32.mrb[11].mxu1  ;;  %4179 = vmatpush3.bf16.msra.mxu1 %v4659_v11  ;;  %4149 = vmatprep.subr.bf16.mxu0 %v4665_v14 }
 0x143   :  { %v692_v43 = vpop.f32.mrb[12].mxu0  ;;  %4181 = vmatprep.subr.bf16.mxu1 %v4665_v14 }
 0x144   :  { %v694_v44 = vpop.f32.mrb[13].mxu0  ;;  %3627 = vmatmul.mubr.f32.gmra.mrb[44].mxu0 %v692_v43 }
 0x145   :  { %v4735_v45 = vpop.f32.mrb[12].mxu1  ;;  %3683 = vmatmul.mubr.f32.gmra.mrb[44].mxu1 %v694_v44  ;;  %4151 = vmatpush3.bf16.msra.mxu0 %v4665_v14 }
 0x146   :  { %v4738_v46 = vpop.f32.mrb[13].mxu1  ;;  %4183 = vmatpush3.bf16.msra.mxu1 %v4665_v14  ;;  %4153 = vmatprep.subr.bf16.mxu0 %v4671_v17 }
 0x147   :  { %v4742_v47 = vpop.f32.mrb[14].mxu0  ;;  %4185 = vmatprep.subr.bf16.mxu1 %v4671_v17 }
 0x148   :  { %v4745_v48 = vpop.f32.mrb[15].mxu0 }
 0x149   :  { %v937_v49 = vpop.f32.mrb[14].mxu1  ;;  %4155 = vmatpush3.bf16.msra.mxu0 %v4671_v17 }
 0x14a   :  { %v939_v50 = vpop.f32.mrb[15].mxu1  ;;  %3629 = vmatprep.mubr.f32.mxu0 %v937_v49  ;;  %4187 = vmatpush3.bf16.msra.mxu1 %v4671_v17 }
 0x14b   :  { %3685 = vmatprep.mubr.f32.mxu1 %v939_v50  ;;  %4189 = vmatprep.subr.bf16.mxu0 %v4621_v62 }
 0x14c   :  { %4220 = vmatprep.subr.bf16.mxu1 %v4621_v62 }
 0x14d   :  { %v943_v51 = vpop.f32.mrb[16].mxu1 }
 0x14e   :  { %v945_v53 = vpop.f32.mrb[17].mxu1  ;;  %3630 = vmatmul.mubr.f32.gmra.mrb[46].mxu0 %v943_v51 }
 0x14f   :  { %3686 = vmatmul.mubr.f32.gmra.mrb[46].mxu1 %v945_v53  ;;  %v4751_v54 = vpop.f32.mrb[16].mxu0 }
 0x150   :  { %v4753_v55 = vpop.f32.mrb[17].mxu0 }
 0x151   :  { %v4755_v56 = vpop.f32.mrb[18].mxu1 }
 0x152   :  { %v4757_v57 = vpop.f32.mrb[19].mxu1 }
 0x153   :  { %v4759_v58 = vpop.f32.mrb[18].mxu0 }
 0x154   :  { %v4761_v59 = vpop.f32.mrb[19].mxu0 }
 0x157   :  { %v1188_v60 = vpop.f32.mrb[20].mxu0 }
 0x158   :  { %v1190_v61 = vpop.f32.mrb[21].mxu0  ;;  %3632 = vmatprep.mubr.f32.mxu0 %v1188_v60 }
 0x159   :  { %v4763_v63 = vpop.f32.mrb[20].mxu1  ;;  %3688 = vmatprep.mubr.f32.mxu1 %v1190_v61 }
 0x15a   :  { %v4765_v1 = vpop.f32.mrb[21].mxu1 }
 0x15b   :  { %v1194_v3 = vpop.f32.mrb[22].mxu0 }
 0x15c   :  { %v1196_v4 = vpop.f32.mrb[23].mxu0  ;;  %3633 = vmatmul.mubr.f32.gmra.mrb[48].mxu0 %v1194_v3 }
 0x15d   :  { %v4767_v6 = vpop.f32.mrb[22].mxu1  ;;  %3689 = vmatmul.mubr.f32.gmra.mrb[48].mxu1 %v1196_v4 }
 0x15e   :  { %v4769_v7 = vpop.f32.mrb[23].mxu1 }
 0x15f   :  { %v4771_v40 = vpop.f32.mrb[24].mxu0 }
 0x160   :  { %v4773_v8 = vpop.f32.mrb[25].mxu0 }
 0x161   :  { %v1439_v52 = vpop.f32.mrb[24].mxu1 }
 0x162   :  { %v1441_v10 = vpop.f32.mrb[25].mxu1  ;;  %3635 = vmatprep.mubr.f32.mxu0 %v1439_v52 }
 0x163   :  { %3691 = vmatprep.mubr.f32.mxu1 %v1441_v10 }
 0x165   :  { %v1445_v12 = vpop.f32.mrb[26].mxu1 }
 0x166   :  { %v1447_v13 = vpop.f32.mrb[27].mxu1  ;;  %3636 = vmatmul.mubr.f32.gmra.mrb[50].mxu0 %v1445_v12 }
 0x167   :  { %3692 = vmatmul.mubr.f32.gmra.mrb[50].mxu1 %v1447_v13  ;;  %v4775_v15 = vpop.f32.mrb[26].mxu0 }
 0x168   :  { %v4777_v16 = vpop.f32.mrb[27].mxu0 }
 0x169   :  { %v4779_v18 = vpop.f32.mrb[28].mxu1 }
 0x16a   :  { %v4781_v19 = vpop.f32.mrb[29].mxu1 }
 0x16b   :  { %v4783_v22 = vpop.f32.mrb[28].mxu0 }
 0x16c   :  { %v4785_v23 = vpop.f32.mrb[29].mxu0 }
 0x16f   :  { %v1690_v28 = vpop.f32.mrb[30].mxu0 }
 0x170   :  { %v1692_v29 = vpop.f32.mrb[31].mxu0  ;;  %3638 = vmatprep.mubr.f32.mxu0 %v1690_v28 }
 0x171   :  { %v4787_v30 = vpop.f32.mrb[30].mxu1  ;;  %3694 = vmatprep.mubr.f32.mxu1 %v1692_v29 }
 0x172   :  { %v4789_v31 = vpop.f32.mrb[31].mxu1 }
 0x173   :  { %v1696_v38 = vpop.f32.mrb[32].mxu0 }
 0x174   :  { %v1698_v39 = vpop.f32.mrb[33].mxu0  ;;  %3639 = vmatmul.mubr.f32.gmra.mrb[52].mxu0 %v1696_v38 }
 0x175   :  { %v4791_v43 = vpop.f32.mrb[32].mxu1  ;;  %3695 = vmatmul.mubr.f32.gmra.mrb[52].mxu1 %v1698_v39 }
 0x176   :  { %v4793_v44 = vpop.f32.mrb[33].mxu1 }
 0x177   :  { %v4795_v49 = vpop.f32.mrb[34].mxu0 }
 0x178   :  { %v4797_v50 = vpop.f32.mrb[35].mxu0 }
 0x179   :  { %v1941_v51 = vpop.f32.mrb[34].mxu1 }
 0x17a   :  { %v1943_v53 = vpop.f32.mrb[35].mxu1  ;;  %3641 = vmatprep.mubr.f32.mxu0 %v1941_v51 }
 0x17b   :  { %3697 = vmatprep.mubr.f32.mxu1 %v1943_v53 }
 0x17d   :  { %v1947_v60 = vpop.f32.mrb[36].mxu1 }
 0x17e   :  { %v1949_v61 = vpop.f32.mrb[37].mxu1  ;;  %3642 = vmatmul.mubr.f32.gmra.mrb[54].mxu0 %v1947_v60 }
 0x17f   :  { %3698 = vmatmul.mubr.f32.gmra.mrb[54].mxu1 %v1949_v61  ;;  %3732 = vmatprep.mubr.f32.mxu0 %v4683_v20  ;;  %v2018_v3 = vpop.f32.mrb[36].mxu0 }
 0x180   :  { %3788 = vmatprep.mubr.f32.mxu1 %v4685_v21  ;;  %v2020_v4 = vpop.f32.mrb[37].mxu0 }
 0x181   :  { %v4801_v52 = vpop.f32.mrb[38].mxu1 }
 0x182   :  { %3733 = vmatmul.mubr.f32.vlgmr.msra.gmra.mrb[56].mxu0 %v4687_v24  ;;  %v4804_v10 = vpop.f32.mrb[39].mxu1 }
 0x183   :  { %3735 = vmatprep.mubr.f32.mxu0 %v4705_v32  ;;  %3789 = vmatmul.mubr.f32.vlgmr.msra.gmra.mrb[56].mxu1 %v4690_v25  ;;  %v2024_v12 = vpop.f32.mrb[38].mxu0 }
 0x184   :  { %4191 = vmatpush3.bf16.msra.mxu0 %v4621_v62  ;;  %3791 = vmatprep.mubr.f32.mxu1 %v4708_v33  ;;  %v2026_v20 = vpop.f32.mrb[39].mxu0 }
 0x185   :  { %4228 = vmatpush3.bf16.msra.mxu1 %v4621_v62  ;;  %4193 = vmatprep.subr.bf16.mxu0 %v4627_v2 }
 0x186   :  { %3736 = vmatmul.mubr.f32.gmra.mrb[58].mxu0 %v4718_v36  ;;  %4221 = vmatprep.subr.bf16.mxu1 %v4627_v2 }
 0x187   :  { %3738 = vmatprep.mubr.f32.mxu0 %v4727_v41  ;;  %3792 = vmatmul.mubr.f32.gmra.mrb[58].mxu1 %v4721_v37 }
 0x188   :  { %4195 = vmatpush3.bf16.msra.mxu0 %v4627_v2  ;;  %3794 = vmatprep.mubr.f32.mxu1 %v4730_v42 }
 0x189   :  { %4229 = vmatpush3.bf16.msra.mxu1 %v4627_v2  ;;  %4197 = vmatprep.subr.bf16.mxu0 %v4639_v5 }
 0x18a   :  { %3739 = vmatmul.mubr.f32.gmra.mrb[60].mxu0 %v4735_v45  ;;  %4222 = vmatprep.subr.bf16.mxu1 %v4639_v5 }
 0x18b   :  { %3741 = vmatprep.mubr.f32.mxu0 %v4751_v54  ;;  %3795 = vmatmul.mubr.f32.gmra.mrb[60].mxu1 %v4738_v46 }
 0x18c   :  { %4199 = vmatpush3.bf16.msra.mxu0 %v4639_v5  ;;  %3797 = vmatprep.mubr.f32.mxu1 %v4753_v55 }
 0x18d   :  { %4230 = vmatpush3.bf16.msra.mxu1 %v4639_v5  ;;  %4201 = vmatprep.subr.bf16.mxu0 %v4647_v0 }
 0x18e   :  { %3742 = vmatmul.mubr.f32.gmra.mrb[62].mxu0 %v4759_v58  ;;  %4223 = vmatprep.subr.bf16.mxu1 %v4647_v0 }
 0x18f   :  { %3744 = vmatprep.mubr.f32.mxu0 %v4763_v63  ;;  %3798 = vmatmul.mubr.f32.gmra.mrb[62].mxu1 %v4761_v59 }
 0x190   :  { %4203 = vmatpush3.bf16.msra.mxu0 %v4647_v0  ;;  %3800 = vmatprep.mubr.f32.mxu1 %v4765_v1 }
 0x191   :  { %4231 = vmatpush3.bf16.msra.mxu1 %v4647_v0  ;;  %4205 = vmatprep.subr.bf16.mxu0 %v4653_v9 }
 0x192   :  { %3745 = vmatmul.mubr.f32.gmra.mrb[64].mxu0 %v4767_v6  ;;  %4224 = vmatprep.subr.bf16.mxu1 %v4653_v9 }
 0x193   :  { %3747 = vmatprep.mubr.f32.mxu0 %v4775_v15  ;;  %3801 = vmatmul.mubr.f32.gmra.mrb[64].mxu1 %v4769_v7 }
 0x194   :  { %4207 = vmatpush3.bf16.msra.mxu0 %v4653_v9  ;;  %3803 = vmatprep.mubr.f32.mxu1 %v4777_v16 }
 0x195   :  { %4232 = vmatpush3.bf16.msra.mxu1 %v4653_v9  ;;  %4209 = vmatprep.subr.bf16.mxu0 %v4659_v11 }
 0x196   :  { %3748 = vmatmul.mubr.f32.gmra.mrb[66].mxu0 %v4783_v22  ;;  %4225 = vmatprep.subr.bf16.mxu1 %v4659_v11 }
 0x197   :  { %3750 = vmatprep.mubr.f32.mxu0 %v4787_v30  ;;  %3804 = vmatmul.mubr.f32.gmra.mrb[66].mxu1 %v4785_v23 }
 0x198   :  { %4211 = vmatpush3.bf16.msra.mxu0 %v4659_v11  ;;  %3806 = vmatprep.mubr.f32.mxu1 %v4789_v31 }
 0x199   :  { %4233 = vmatpush3.bf16.msra.mxu1 %v4659_v11  ;;  %4213 = vmatprep.subr.bf16.mxu0 %v4665_v14 }
 0x19a   :  { %3751 = vmatmul.mubr.f32.gmra.mrb[68].mxu0 %v4791_v43  ;;  %4226 = vmatprep.subr.bf16.mxu1 %v4665_v14 }
 0x19b   :  { %3753 = vmatprep.mubr.f32.mxu0 %v2018_v3  ;;  %3807 = vmatmul.mubr.f32.gmra.mrb[68].mxu1 %v4793_v44 }
 0x19c   :  { %4215 = vmatpush3.bf16.msra.mxu0 %v4665_v14  ;;  %3809 = vmatprep.mubr.f32.mxu1 %v2020_v4 }
 0x19d   :  { %4234 = vmatpush3.bf16.msra.mxu1 %v4665_v14  ;;  %4217 = vmatprep.subr.bf16.mxu0 %v4671_v17 }
 0x19e   :  { %3754 = vmatmul.mubr.f32.gmra.mrb[70].mxu0 %v2024_v12  ;;  %4227 = vmatprep.subr.bf16.mxu1 %v4671_v17 }
 0x19f   :  { %3810 = vmatmul.mubr.f32.gmra.mrb[70].mxu1 %v2026_v20  ;;  %3844 = vmatprep.mubr.f32.mxu0 %v4697_v27 }
 0x1a0   :  { %4219 = vmatpush3.bf16.msra.mxu0 %v4671_v17  ;;  %3856 = vmatprep.mubr.f32.mxu1 %v4773_v8 }
 0x1a1   :  { %4235 = vmatpush3.bf16.msra.mxu1 %v4671_v17 }
 0x1a3   :  { %3845 = vmatmul.mubr.f32.vlgmr.msra.gmra.mrb[72].mxu0 %v4694_v26 }
 0x1a4   :  { %3847 = vmatprep.mubr.f32.mxu0 %v4714_v35  ;;  %3857 = vmatmul.mubr.f32.vlgmr.msra.gmra.mrb[72].mxu1 %v4771_v40 }
 0x1a5   :  { %3859 = vmatprep.mubr.f32.mxu1 %v4781_v19 }
 0x1a7   :  { %3848 = vmatmul.mubr.f32.gmra.mrb[74].mxu0 %v4711_v34 }
 0x1a8   :  { %3850 = vmatprep.mubr.f32.mxu0 %v4745_v48  ;;  %3860 = vmatmul.mubr.f32.gmra.mrb[74].mxu1 %v4779_v18 }
 0x1a9   :  { %3862 = vmatprep.mubr.f32.mxu1 %v4797_v50 }
 0x1ab   :  { %3851 = vmatmul.mubr.f32.gmra.mrb[76].mxu0 %v4742_v47 }
 0x1ac   :  { %3853 = vmatprep.mubr.f32.mxu0 %v4757_v57  ;;  %3863 = vmatmul.mubr.f32.gmra.mrb[76].mxu1 %v4795_v49 }
 0x1ad   :  { %3865 = vmatprep.mubr.f32.mxu1 %v4804_v10 }
 0x1af   :  { %3854 = vmatmul.mubr.f32.gmra.mrb[78].mxu0 %v4755_v56 }
 0x1b0   :  { %3866 = vmatmul.mubr.f32.gmra.mrb[78].mxu1 %v4801_v52 }
 0x1ff   :  { %v3622_v62 = vpop.f32.mrb[40].mxu0 }
 0x200   :  { %v4877_v2 = vmul.f32 %v3622_v62, %v3622_v62  ;;  %v3678_v5 = vpop.f32.mrb[40].mxu1  ;;  %v2170_v0 = vpop.f32.mrb[41].mxu0 }
 0x201   :  { %v4879_v9 = vmul.f32 %v3678_v5, %v3678_v5  ;;  %v4881_v11 = vmul.f32 %v3678_v5, %v3622_v62  ;;  %v4883_v14 = vmul.f32 %v2170_v0, %v2170_v0  ;;  %v2315_v17 = vpop.f32.mrb[41].mxu1 }
 0x202   :  { %v4885_v21 = vmul.f32 %v2315_v17, %v2315_v17  ;;  %v4887_v24 = vmul.f32 %v2315_v17, %v2170_v0 }
 0x203   :  { %5279 = vst [vmem:[#allocation15_spill] sm:$0xff] %v4881_v11  ;;  %v4891_v25 = vadd.f32 %v4879_v9, %v4877_v2 }
 0x204   :  { %5280 = vst [vmem:[#allocation16_spill] sm:$0xff] %v4887_v24  ;;  %v4895_v26 = vadd.f32 %v4885_v21, %v4883_v14 }
 0x209   :  { %v3625_v27 = vpop.f32.mrb[42].mxu0 }
 0x20a   :  { %v4897_v32 = vmul.f32 %v3625_v27, %v3625_v27  ;;  %v2180_v33 = vpop.f32.mrb[43].mxu0  ;;  %v3681_v34 = vpop.f32.mrb[42].mxu1 }
 0x20b   :  { %v4899_v35 = vmul.f32 %v2180_v33, %v2180_v33  ;;  %v4901_v36 = vmul.f32 %v3681_v34, %v3681_v34  ;;  %v4903_v37 = vmul.f32 %v3681_v34, %v3625_v27  ;;  %v2325_v41 = vpop.f32.mrb[43].mxu1 }
 0x20c   :  { %v4905_v42 = vmul.f32 %v2325_v41, %v2325_v41  ;;  %v4907_v45 = vmul.f32 %v2325_v41, %v2180_v33 }
 0x20d   :  { %v4911_v46 = vadd.f32 %v4901_v36, %v4897_v32 }
 0x20e   :  { %v4915_v47 = vadd.f32 %v4905_v42, %v4899_v35 }
 0x217   :  { %v3628_v48 = vpop.f32.mrb[44].mxu0 }
 0x218   :  { %v4917_v54 = vmul.f32 %v3628_v48, %v3628_v48  ;;  %v3684_v55 = vpop.f32.mrb[44].mxu1  ;;  %v2190_v56 = vpop.f32.mrb[45].mxu0 }
 0x219   :  { %v4919_v57 = vmul.f32 %v3684_v55, %v3684_v55  ;;  %v4921_v58 = vmul.f32 %v3684_v55, %v3628_v48  ;;  %v4923_v59 = vmul.f32 %v2190_v56, %v2190_v56  ;;  %v2335_v63 = vpop.f32.mrb[45].mxu1 }
 0x21a   :  { %v4925_v1 = vmul.f32 %v2335_v63, %v2335_v63  ;;  %v4927_v6 = vmul.f32 %v2335_v63, %v2190_v56 }
 0x21b   :  { %v4931_v7 = vadd.f32 %v4919_v57, %v4917_v54 }
 0x21c   :  { %v4935_v40 = vadd.f32 %v4925_v1, %v4923_v59 }
 0x221   :  { %v3631_v8 = vpop.f32.mrb[46].mxu0 }
 0x222   :  { %v4937_v13 = vmul.f32 %v3631_v8, %v3631_v8  ;;  %v2200_v15 = vpop.f32.mrb[47].mxu0  ;;  %v3687_v16 = vpop.f32.mrb[46].mxu1 }
 0x223   :  { %v4939_v18 = vmul.f32 %v2200_v15, %v2200_v15  ;;  %v4941_v19 = vmul.f32 %v3687_v16, %v3687_v16  ;;  %v4943_v22 = vmul.f32 %v3687_v16, %v3631_v8  ;;  %v2345_v23 = vpop.f32.mrb[47].mxu1 }
 0x224   :  { %v4945_v28 = vmul.f32 %v2345_v23, %v2345_v23  ;;  %v4947_v29 = vmul.f32 %v2345_v23, %v2200_v15 }
 0x225   :  { %v4951_v30 = vadd.f32 %v4941_v19, %v4937_v13 }
 0x226   :  { %v4955_v31 = vadd.f32 %v4945_v28, %v4939_v18 }
 0x22f   :  { %v3634_v38 = vpop.f32.mrb[48].mxu0 }
 0x230   :  { %v4957_v39 = vmul.f32 %v3634_v38, %v3634_v38  ;;  %v3690_v43 = vpop.f32.mrb[48].mxu1  ;;  %v2210_v44 = vpop.f32.mrb[49].mxu0 }
 0x231   :  { %v4959_v49 = vmul.f32 %v3690_v43, %v3690_v43  ;;  %v4961_v50 = vmul.f32 %v3690_v43, %v3634_v38  ;;  %v4963_v51 = vmul.f32 %v2210_v44, %v2210_v44  ;;  %v2355_v53 = vpop.f32.mrb[49].mxu1 }
 0x232   :  { %v4965_v60 = vmul.f32 %v2355_v53, %v2355_v53  ;;  %v4967_v61 = vmul.f32 %v2355_v53, %v2210_v44 }
 0x233   :  { %v4971_v3 = vadd.f32 %v4959_v49, %v4957_v39 }
 0x234   :  { %v4975_v4 = vadd.f32 %v4965_v60, %v4963_v51 }
 0x239   :  { %v3637_v52 = vpop.f32.mrb[50].mxu0 }
 0x23a   :  { %v4977_v10 = vmul.f32 %v3637_v52, %v3637_v52  ;;  %v2220_v12 = vpop.f32.mrb[51].mxu0  ;;  %v3693_v20 = vpop.f32.mrb[50].mxu1 }
 0x23b   :  { %v4979_v62 = vmul.f32 %v2220_v12, %v2220_v12  ;;  %v4981_v5 = vmul.f32 %v3693_v20, %v3693_v20  ;;  %v4983_v0 = vmul.f32 %v3693_v20, %v3637_v52  ;;  %v2365_v17 = vpop.f32.mrb[51].mxu1 }
 0x23c   :  { %v4985_v27 = vmul.f32 %v2365_v17, %v2365_v17  ;;  %v4987_v33 = vmul.f32 %v2365_v17, %v2220_v12 }
 0x23d   :  { %v4991_v34 = vadd.f32 %v4981_v5, %v4977_v10 }
 0x23e   :  { %v4995_v41 = vadd.f32 %v4985_v27, %v4979_v62 }
 0x23f   :  { %5281 = vst [vmem:[#allocation17_spill] sm:$0xff] %v4991_v34 }
 0x240   :  { %5282 = vst [vmem:[#allocation18_spill] sm:$0xff] %v4995_v41 }
 0x247   :  { %v3640_v48 = vpop.f32.mrb[52].mxu0 }
 0x248   :  { %v4997_v55 = vmul.f32 %v3640_v48, %v3640_v48  ;;  %v3696_v56 = vpop.f32.mrb[52].mxu1  ;;  %v2230_v63 = vpop.f32.mrb[53].mxu0 }
 0x249   :  { %v4999_v8 = vmul.f32 %v3696_v56, %v3696_v56  ;;  %v5001_v15 = vmul.f32 %v3696_v56, %v3640_v48  ;;  %v5003_v16 = vmul.f32 %v2230_v63, %v2230_v63  ;;  %v2375_v23 = vpop.f32.mrb[53].mxu1 }
 0x24a   :  { %5283 = vst [vmem:[#allocation19_spill] sm:$0xff] %v4997_v55  ;;  %v5005_v38 = vmul.f32 %v2375_v23, %v2375_v23  ;;  %v5007_v43 = vmul.f32 %v2375_v23, %v2230_v63 }
 0x24b   :  { %5284 = vst [vmem:[#allocation20_spill] sm:$0xff] %v4999_v8  ;;  %5285 = vst [vmem:[#allocation21_spill] sm:$0xff] %v5003_v16  ;;  %v5011_v44 = vadd.f32 %v4999_v8, %v4997_v55  ;;  %v2926_v8 = vmul.f32 2.0, %v4881_v11 }
 0x24c   :  { %5286 = vst [vmem:[#allocation22_spill] sm:$0xff] %v5005_v38  ;;  %5287 = vst [vmem:[#allocation23_spill] sm:$0xff] %v5007_v43  ;;  %v5015_v53 = vadd.f32 %v5005_v38, %v5003_v16  ;;  %v3120_v38 = vlaneseq }
 0x24d   :  { %5288 = vst [vmem:[#allocation24_spill] sm:$0xff] %v5011_v44 }
 0x24e   :  { %5289 = vst [vmem:[#allocation25_spill] sm:$0xff] %v5015_v53  ;;  %v5044_v34 = vand.u32 127, %v3120_v38 }
 0x250   :  { %vm3124_vm1 = vcmp.lt.s32.totalorder %v5044_v34, 16 }
 0x251   :  { %v3643_v52 = vpop.f32.mrb[54].mxu0 }
 0x252   :  { %v5017_v12 = vmul.f32 %v3643_v52, %v3643_v52  ;;  %v2240_v20 = vpop.f32.mrb[55].mxu0  ;;  %v3699_v17 = vpop.f32.mrb[54].mxu1 }
 0x253   :  { %v5019_v48 = vmul.f32 %v2240_v20, %v2240_v20  ;;  %v5021_v56 = vmul.f32 %v3699_v17, %v3699_v17  ;;  %v5023_v41 = vmul.f32 %v3699_v17, %v3643_v52  ;;  %v2385_v63 = vpop.f32.mrb[55].mxu1 }
 0x254   :  { %5290 = vst [vmem:[#allocation26_spill] sm:$0xff] %v5017_v12  ;;  %v5025_v23 = vmul.f32 %v2385_v63, %v2385_v63  ;;  %v5027_v43 = vmul.f32 %v2385_v63, %v2240_v20 }
 0x255   :  { %5291 = vst [vmem:[#allocation27_spill] sm:$0xff] %v5021_v56  ;;  %5292 = vst [vmem:[#allocation28_spill] sm:$0xff] %v5023_v41  ;;  %v5031_v44 = vadd.f32 %v5021_v56, %v5017_v12  ;;  %v3734_v53 = vpop.f32.mrb[56].mxu0  ;;  %v2928_v56 = vmul.f32 2.0, %v4903_v37 }
 0x256   :  { %5293 = vst [vmem:[#allocation29_spill] sm:$0xff] %v5027_v43  ;;  %v5036_v16 = vadd.f32 %v5025_v23, %v5019_v48  ;;  %v2878_v52 = vsub.f32 %v3734_v53, %v4877_v2  ;;  %v2460_v17 = vpop.f32.mrb[57].mxu0  ;;  %v3790_v41 = vpop.f32.mrb[56].mxu1  ;;  %v2925_v43 = vmul.f32 2.0, %v4887_v24  ;;  %v3022_v2 = vadd.f32 0.0001, %v4891_v25 }
 0x257   :  { %5294 = vst [vmem:[#allocation30_spill] sm:$0xff] %v5031_v44  ;;  %v2877_v55 = vsub.f32 %v2460_v17, %v4883_v14  ;;  %v2894_v20 = vsub.f32 %v3790_v41, %v4879_v9  ;;  %v2605_v63 = vpop.f32.mrb[57].mxu1  ;;  %v2927_v41 = vmul.f32 2.0, %v4907_v45 }
 0x258   :  { %5295 = vst [vmem:[#allocation31_spill] sm:$0xff] %v5036_v16  ;;  %v2893_v44 = vsub.f32 %v2605_v63, %v4885_v21  ;;  %v5046_v16 = vadd.f32 0.0001, %v2926_v8  ;;  %v3021_v8 = vadd.f32 0.0001, %v4895_v26 }
 0x259   :  { %v3038_v11 = vadd.f32 %v2894_v20, %v2878_v52  ;;  %v3737_v12 = vpop.f32.mrb[58].mxu0  ;;  %v5053_v20 = vadd.f32 0.0001, %v2925_v43 }
 0x25a   :  { %v3037_v53 = vadd.f32 %v2893_v44, %v2877_v55  ;;  %v2880_v14 = vsub.f32 %v3737_v12, %v4897_v32  ;;  %v2470_v17 = vpop.f32.mrb[59].mxu0  ;;  %v3793_v9 = vpop.f32.mrb[58].mxu1  ;;  %v5057_v55 = vadd.f32 0.0001, %v2928_v56  ;;  %v2930_v32 = vmul.f32 2.0, %v4921_v58 }
 0x25b   :  { %v3054_v24 = vadd.f32 0.0009, %v3038_v11  ;;  %v2879_v21 = vsub.f32 %v2470_v17, %v4899_v35  ;;  %v2896_v63 = vsub.f32 %v3793_v9, %v4901_v36  ;;  %v2615_v52 = vpop.f32.mrb[59].mxu1  ;;  %v3024_v35 = vadd.f32 0.0001, %v4911_v46 }
 0x25c   :  { %v3053_v38 = vadd.f32 0.0009, %v3037_v53  ;;  %v2895_v25 = vsub.f32 %v2615_v52, %v4905_v42  ;;  %v5066_v53 = vadd.f32 0.0001, %v2927_v41 }
 0x25d   :  { %v5060_v44 = vmul.f32 %v3054_v24, %v3022_v2  ;;  %v3040_v12 = vadd.f32 %v2896_v63, %v2880_v14  ;;  %v3740_v11 = vpop.f32.mrb[60].mxu0  ;;  %v3023_v2 = vadd.f32 0.0001, %v4915_v47  ;;  %v2929_v14 = vmul.f32 2.0, %v4927_v6 }
 0x25e   :  { %v5063_v17 = vmul.f32 %v3053_v38, %v3021_v8  ;;  %v3039_v36 = vadd.f32 %v2895_v25, %v2879_v21  ;;  %v2882_v43 = vsub.f32 %v3740_v11, %v4917_v54  ;;  %v2480_v9 = vpop.f32.mrb[61].mxu0  ;;  %v3796_v26 = vpop.f32.mrb[60].mxu1  ;;  %v5073_v21 = vadd.f32 0.0001, %v2930_v32 }
 0x25f   :  { %v3056_v42 = vadd.f32 0.0009, %v3040_v12  ;;  %v2881_v56 = vsub.f32 %v2480_v9, %v4923_v59  ;;  %v2898_v52 = vsub.f32 %v3796_v26, %v4919_v57  ;;  %v2625_v24 = vpop.f32.mrb[61].mxu1  ;;  %v2932_v54 = vmul.f32 2.0, %v4943_v22 }
 0x260   :  { %v3055_v46 = vadd.f32 0.0009, %v3039_v36  ;;  %v2897_v63 = vsub.f32 %v2625_v24, %v4925_v1  ;;  %v3026_v59 = vadd.f32 0.0001, %v4931_v7  ;;  %v2931_v36 = vmul.f32 2.0, %v4947_v29 }
 0x261   :  { %v5076_v8 = vmul.f32 %v3056_v42, %v3024_v35  ;;  %v3042_v41 = vadd.f32 %v2898_v52, %v2882_v43  ;;  %v3743_v38 = vpop.f32.mrb[62].mxu0  ;;  %v5085_v26 = vadd.f32 0.0001, %v2929_v14  ;;  %v3025_v43 = vadd.f32 0.0001, %v4935_v40 }
 0x262   :  { %v5079_v25 = vmul.f32 %v3055_v46, %v3023_v2  ;;  %v3041_v57 = vadd.f32 %v2897_v63, %v2881_v56  ;;  %v2884_v47 = vsub.f32 %v3743_v38, %v4937_v13  ;;  %v2490_v12 = vpop.f32.mrb[63].mxu0  ;;  %v3799_v11 = vpop.f32.mrb[62].mxu1  ;;  %v5089_v56 = vadd.f32 0.0001, %v2932_v54 }
 0x263   :  { %v3058_v1 = vadd.f32 0.0009, %v3042_v41  ;;  %v2883_v32 = vsub.f32 %v2490_v12, %v4939_v18  ;;  %v2900_v9 = vsub.f32 %v3799_v11, %v4941_v19  ;;  %v2635_v35 = vpop.f32.mrb[63].mxu1  ;;  %v2934_v13 = vmul.f32 2.0, %v4961_v50 }
 0x264   :  { %v3057_v7 = vadd.f32 0.0009, %v3041_v57  ;;  %v2899_v42 = vsub.f32 %v2635_v35, %v4945_v28  ;;  %v3028_v18 = vadd.f32 0.0001, %v4951_v30  ;;  %v5098_v41 = vadd.f32 0.0001, %v2931_v36 }
 0x265   :  { %v5092_v52 = vmul.f32 %v3058_v1, %v3026_v59  ;;  %v3044_v24 = vadd.f32 %v2900_v9, %v2884_v47  ;;  %v3746_v2 = vpop.f32.mrb[64].mxu0  ;;  %v3027_v57 = vadd.f32 0.0001, %v4955_v31  ;;  %v2933_v47 = vmul.f32 2.0, %v4967_v61 }
 0x266   :  { %v5095_v46 = vmul.f32 %v3057_v7, %v3025_v43  ;;  %v3043_v19 = vadd.f32 %v2899_v42, %v2883_v32  ;;  %v2886_v14 = vsub.f32 %v3746_v2, %v4957_v39  ;;  %v2500_v63 = vpop.f32.mrb[65].mxu0  ;;  %v3802_v40 = vpop.f32.mrb[64].mxu1  ;;  %v5105_v11 = vadd.f32 0.0001, %v2934_v13 }
 0x267   :  { %v3060_v28 = vadd.f32 0.0009, %v3044_v24  ;;  %v2885_v54 = vsub.f32 %v2500_v63, %v4963_v51  ;;  %v2902_v38 = vsub.f32 %v3802_v40, %v4959_v49  ;;  %v2645_v59 = vpop.f32.mrb[65].mxu1  ;;  %v2936_v39 = vmul.f32 2.0, %v4983_v0 }
 0x268   :  { %v3059_v30 = vadd.f32 0.0009, %v3043_v19  ;;  %v2901_v12 = vsub.f32 %v2645_v59, %v4965_v60  ;;  %v3030_v51 = vadd.f32 0.0001, %v4971_v3  ;;  %v2935_v7 = vmul.f32 2.0, %v4987_v33 }
 0x269   :  { %v5108_v1 = vmul.f32 %v3060_v28, %v3028_v18  ;;  %v3046_v36 = vadd.f32 %v2902_v38, %v2886_v14  ;;  %v3749_v32 = vpop.f32.mrb[66].mxu0  ;;  %v5117_v2 = vadd.f32 0.0001, %v2933_v47  ;;  %v3029_v18 = vadd.f32 0.0001, %v4975_v4 }
 0x26a   :  { %v5111_v9 = vmul.f32 %v3059_v30, %v3027_v57  ;;  %v3045_v49 = vadd.f32 %v2901_v12, %v2885_v54  ;;  %v2888_v31 = vsub.f32 %v3749_v32, %v4977_v10  ;;  %v2510_v35 = vpop.f32.mrb[67].mxu0  ;;  %v3805_v43 = vpop.f32.mrb[66].mxu1  ;;  %v5121_v14 = vadd.f32 0.0001, %v2936_v39  ;;  %v5296_v54 = vld [vmem:[#allocation17_spill] sm:$0xff]  ;;  %v5299_v39 = vld [vmem:[#allocation20_spill] sm:$0xff] }
 0x26b   :  { %v3062_v60 = vadd.f32 0.0009, %v3046_v36  ;;  %v2887_v42 = vsub.f32 %v2510_v35, %v4979_v62  ;;  %v2904_v13 = vsub.f32 %v3805_v43, %v4981_v5  ;;  %v2655_v24 = vpop.f32.mrb[67].mxu1  ;;  %v2938_v10 = vmul.f32 2.0, %v5001_v15  ;;  %v5297_v5 = vld [vmem:[#allocation19_spill] sm:$0xff]  ;;  %v5298_v36 = vld [vmem:[#allocation21_spill] sm:$0xff] }
 0x26c   :  { %v3061_v3 = vadd.f32 0.0009, %v3045_v49  ;;  %v2903_v19 = vsub.f32 %v2655_v24, %v4985_v27  ;;  %v3032_v38 = vadd.f32 0.0001, %v5296_v54  ;;  %v5126_v12 = vadd.f32 0.0001, %v2935_v7 }
 0x26d   :  { %v3078_v63 = vmul.f32 %v3062_v60, %v3030_v51  ;;  %v3048_v40 = vadd.f32 %v2904_v13, %v2888_v31  ;;  %v3752_v28 = vpop.f32.mrb[68].mxu0  ;;  %v5300_v35 = vld [vmem:[#allocation18_spill] sm:$0xff]  ;;  %v5301_v31 = vld [vmem:[#allocation23_spill] sm:$0xff]  ;;  %v5135_v24 = vadd.f32 0.0001, %v2938_v10  ;;  %4244 = vrcp.f32 %v5060_v44 }
 0x26e   :  { %v3077_v62 = vmul.f32 %v3061_v3, %v3029_v18  ;;  %v3047_v59 = vadd.f32 %v2903_v19, %v2887_v42  ;;  %v2890_v57 = vsub.f32 %v3752_v28, %v5297_v5  ;;  %v2520_v47 = vpop.f32.mrb[69].mxu0  ;;  %v3808_v30 = vpop.f32.mrb[68].mxu1  ;;  %v3031_v51 = vadd.f32 0.0001, %v5300_v35  ;;  %v5302_v13 = vld [vmem:[#allocation22_spill] sm:$0xff]  ;;  %v5303_v18 = vld [vmem:[#allocation24_spill] sm:$0xff] }
 0x26f   :  { %v3064_v4 = vadd.f32 0.0009, %v3048_v40  ;;  %v2889_v27 = vsub.f32 %v2520_v47, %v5298_v36  ;;  %v2906_v32 = vsub.f32 %v3808_v30, %v5299_v39  ;;  %v2665_v49 = vpop.f32.mrb[69].mxu1  ;;  %v5132_v43 = vmul.f32 2.0, %v5301_v31  ;;  %v5304_v5 = vld [vmem:[#allocation26_spill] sm:$0xff]  ;;  %v5305_v10 = vld [vmem:[#allocation27_spill] sm:$0xff] }
 0x270   :  { %v3063_v60 = vadd.f32 0.0009, %v3047_v59  ;;  %v2905_v42 = vsub.f32 %v2665_v49, %v5302_v13  ;;  %v3034_v3 = vadd.f32 0.0001, %v5303_v18  ;;  %4246 = vrcp.f32 %v5063_v17  ;;  %v5306_v13 = vld [vmem:[#allocation25_spill] sm:$0xff]  ;;  %v5308_v17 = vld [vmem:[#allocation30_spill] sm:$0xff] }
 0x271   :  { %v3080_v7 = vmul.f32 %v3064_v4, %v3032_v38  ;;  %v3050_v19 = vadd.f32 %v2906_v32, %v2890_v57  ;;  %v3755_v40 = vpop.f32.mrb[70].mxu0  ;;  %v3033_v38 = vadd.f32 0.0001, %v5306_v13  ;;  %4248 = vrcp.f32 %v5076_v8  ;;  %v5307_v4 = vld [vmem:[#allocation28_spill] sm:$0xff] }
 0x272   :  { %v3079_v28 = vmul.f32 %v3063_v60, %v3031_v51  ;;  %v3049_v54 = vadd.f32 %v2905_v42, %v2889_v27  ;;  %v2892_v47 = vsub.f32 %v3755_v40, %v5304_v5  ;;  %v2530_v30 = vpop.f32.mrb[71].mxu0  ;;  %v3811_v36 = vpop.f32.mrb[70].mxu1  ;;  %v5147_v27 = vmul.f32 2.0, %v5307_v4  ;;  %v5310_v40 = vld [vmem:[#allocation15_spill] sm:$0xff] }
 0x273   :  { %v3066_v59 = vadd.f32 0.0009, %v3050_v19  ;;  %v2891_v39 = vsub.f32 %v2530_v30, %v5019_v48  ;;  %v2908_v49 = vsub.f32 %v3811_v36, %v5305_v10  ;;  %v2675_v35 = vpop.f32.mrb[71].mxu1  ;;  %4250 = vrcp.f32 %v3078_v63  ;;  %v5309_v19 = vld [vmem:[#allocation31_spill] sm:$0xff] }
 0x274   :  { %v3065_v57 = vadd.f32 0.0009, %v3049_v54  ;;  %v2907_v44 = vsub.f32 %v2675_v35, %v5025_v23  ;;  %v3036_v60 = vadd.f32 0.0001, %v5308_v17  ;;  %4252 = vrcp.f32 %v3077_v62 }
 0x275   :  { %v3082_v32 = vmul.f32 %v3066_v59, %v3034_v3  ;;  %v3052_v51 = vadd.f32 %v2908_v49, %v2892_v47  ;;  %v3035_v8 = vadd.f32 0.0001, %v5309_v19  ;;  %4254 = vrcp.f32 %v5079_v25  ;;  %v5311_v47 = vld [vmem:[#allocation16_spill] sm:$0xff] }
 0x276   :  { %v5150_v48 = vmul.f32 %v3065_v57, %v3033_v38  ;;  %v3051_v42 = vadd.f32 %v2907_v44, %v2891_v39  ;;  %v3846_v18 = vpop.f32.mrb[72].mxu0  ;;  %4256 = vrcp.f32 %v5092_v52 }
 0x277   :  { %v3068_v23 = vadd.f32 0.0009, %v3052_v51  ;;  %v2910_v54 = vsub.f32 %v3846_v18, %v5310_v40  ;;  %v2750_v5 = vpop.f32.mrb[73].mxu0  ;;  %v3858_v63 = vpop.f32.mrb[72].mxu1  ;;  %4258 = vrcp.f32 %v5095_v46 }
 0x278   :  { %v3067_v3 = vadd.f32 0.0009, %v3051_v42  ;;  %v2909_v62 = vsub.f32 %v2750_v5, %v5311_v47  ;;  %v2918_v30 = vsub.f32 %v3858_v63, %v4961_v50  ;;  %v2790_v36 = vpop.f32.mrb[73].mxu1  ;;  %4260 = vrcp.f32 %v3080_v7  ;;  %v4245_v51 = vpop.eup %4244 }
 0x279   :  { %v5160_v59 = vmul.f32 %v3068_v23, %v3036_v60  ;;  %v2958_v39 = vmul.f32 2.0, %v2910_v54  ;;  %v2917_v25 = vsub.f32 %v2790_v36, %v4967_v61  ;;  %4262 = vrcp.f32 %v3079_v28 }
 0x27a   :  { %v5163_v10 = vmul.f32 %v3067_v3, %v3035_v8  ;;  %v2957_v49 = vmul.f32 2.0, %v2909_v62  ;;  %v2966_v35 = vmul.f32 2.0, %v2918_v30  ;;  %v3849_v13 = vpop.f32.mrb[74].mxu0  ;;  %4264 = vrcp.f32 %v3082_v32  ;;  %v4247_v7 = vpop.eup %4246 }
 0x27b   :  { %v2974_v52 = vadd.f32 0.0009, %v2958_v39  ;;  %v2965_v38 = vmul.f32 2.0, %v2917_v25  ;;  %v2912_v57 = vsub.f32 %v3849_v13, %v4903_v37  ;;  %v2760_v50 = vpop.f32.mrb[75].mxu0  ;;  %v3861_v44 = vpop.f32.mrb[74].mxu1  ;;  %4266 = vrcp.f32 %v5150_v48 }
 0x27c   :  { %v2973_v46 = vadd.f32 0.0009, %v2957_v49  ;;  %v2982_v17 = vadd.f32 0.0009, %v2966_v35  ;;  %v2911_v60 = vsub.f32 %v2760_v50, %v4907_v45  ;;  %v2800_v61 = vpop.f32.mrb[75].mxu1  ;;  %v2920_v28 = vsub.f32 %v3861_v44, %v4983_v0  ;;  %v4249_v8 = vpop.eup %4248 }
 0x27d   :  { %v2990_v42 = vmul.f32 %v2974_v52, %v5046_v16  ;;  %v2981_v18 = vadd.f32 0.0009, %v2965_v38  ;;  %v2960_v19 = vmul.f32 2.0, %v2912_v57  ;;  %v2919_v32 = vsub.f32 %v2800_v61, %v4987_v33  ;;  %v4251_v5 = vpop.eup %4250 }
 0x27e   :  { %v2989_v23 = vmul.f32 %v2973_v46, %v5053_v20  ;;  %v2998_v37 = vmul.f32 %v2982_v17, %v5105_v11  ;;  %v2959_v40 = vmul.f32 2.0, %v2911_v60  ;;  %v3852_v54 = vpop.f32.mrb[76].mxu0  ;;  %v2968_v47 = vmul.f32 2.0, %v2920_v28  ;;  %v4253_v30 = vpop.eup %4252 }
 0x27f   :  { %v3102_v63 = vmul.f32 %v4245_v51, %v2990_v42  ;;  %v2997_v45 = vmul.f32 %v2981_v18, %v5117_v2  ;;  %v2976_v3 = vadd.f32 0.0009, %v2960_v19  ;;  %v2770_v16 = vpop.f32.mrb[77].mxu0  ;;  %v3864_v62 = vpop.f32.mrb[76].mxu1  ;;  %v2967_v25 = vmul.f32 2.0, %v2919_v32 }
 0x280   :  { %v3101_v36 = vmul.f32 %v4247_v7, %v2989_v23  ;;  %v3110_v0 = vmul.f32 %v4251_v5, %v2998_v37  ;;  %v2975_v39 = vadd.f32 0.0009, %v2959_v40  ;;  %v2810_v20 = vpop.f32.mrb[77].mxu1  ;;  %v4255_v49 = vpop.eup %4254  ;;  %v2984_v13 = vadd.f32 0.0009, %v2968_v47 }
 0x281   :  { %v3132_v11 = vsel %vm3124_vm1, %v3102_v63, 0.0  ;;  %v3109_v33 = vmul.f32 %v4253_v30, %v2997_v45  ;;  %v2992_v35 = vmul.f32 %v2976_v3, %v5057_v55  ;;  %v4257_v52 = vpop.eup %4256  ;;  %v2983_v50 = vadd.f32 0.0009, %v2967_v25  ;;  %v5312_v30 = vld [vmem:[#allocation29_spill] sm:$0xff] }
 0x282   :  { %v3131_v2 = vsel %vm3124_vm1, %v3101_v36, 0.0  ;;  %v3140_v38 = vsel %vm3124_vm1, %v3110_v0, 0.0  ;;  %v2991_v57 = vmul.f32 %v2975_v39, %v5066_v53  ;;  %v5181_v44 = vpop.f32.mrb[78].mxu0  ;;  %v4259_v51 = vpop.eup %4258  ;;  %v3000_v55 = vmul.f32 %v2984_v13, %v5121_v14 }
 0x283   :  { %v3147_v46 = vadd.f32 %v3132_v11, %v3131_v2  ;;  %v3139_v17 = vsel %vm3124_vm1, %v3109_v33, 0.0  ;;  %v3104_v60 = vmul.f32 %v4249_v8, %v2992_v35  ;;  %v5186_v61 = vpop.f32.mrb[79].mxu0  ;;  %v5188_v7 = vpop.f32.mrb[78].mxu1  ;;  %v2999_v53 = vmul.f32 %v2983_v50, %v5126_v12 }
 0x284   :  { %v4261_v42 = vpop.eup %4260  ;;  %v5190_v18 = vadd.f32 %v3140_v38, %v3139_v17  ;;  %v3103_v19 = vmul.f32 %v4255_v49, %v2991_v57  ;;  %v2914_v28 = vsub.f32 %v3852_v54, %v4921_v58  ;;  %v5194_v23 = vpop.f32.mrb[79].mxu1  ;;  %v2913_v32 = vsub.f32 %v2770_v16, %v4927_v6 }
 0x285   :  { %v4263_v37 = vpop.eup %4262  ;;  %v3148_v40 = vrot.slane %v3147_v46, 4  ;;  %v3134_v8 = vsel %vm3124_vm1, %v3104_v60, 0.0  ;;  %v3112_v14 = vmul.f32 %v4261_v42, %v3000_v55  ;;  %v2939_v36 = vmul.f32 2.0, %v5312_v30 }
 0x286   :  { %v4265_v5 = vpop.eup %4264  ;;  %v3133_v63 = vsel %vm3124_vm1, %v3103_v19, 0.0  ;;  %v3111_v45 = vmul.f32 %v4263_v37, %v2999_v53  ;;  %v2962_v12 = vmul.f32 2.0, %v2914_v28  ;;  %v2961_v47 = vmul.f32 2.0, %v2913_v32 }
 0x287   :  { %v3149_v3 = vadd.f32 %v3148_v40, %v3147_v46  ;;  %v3154_v58 = vadd.f32 %v3134_v8, %v3133_v63  ;;  %v3142_v54 = vsel %vm3124_vm1, %v3112_v14, 0.0  ;;  %v2922_v16 = vsub.f32 %v3864_v62, %v5001_v15  ;;  %v4267_v60 = vpop.eup %4266 }
 0x288   :  { %v3141_v0 = vsel %vm3124_vm1, %v3111_v45, 0.0  ;;  %v2978_v6 = vadd.f32 0.0009, %v2962_v12  ;;  %v2977_v49 = vadd.f32 0.0009, %v2961_v47  ;;  %v2921_v13 = vsub.f32 %v2810_v20, %v5301_v31 }
 0x289   :  { %v3150_v48 = vrot.slane %v3149_v3, 2  ;;  %v3155_v39 = vrot.slane %v3154_v58, 4  ;;  %v5208_v25 = vadd.f32 %v3142_v54, %v3141_v0  ;;  %v2953_v11 = vadd.f32 0.0001, %v5132_v43 }
 0x28a   :  { %v2994_v33 = vmul.f32 %v2978_v6, %v5073_v21  ;;  %v2970_v35 = vmul.f32 2.0, %v2922_v16  ;;  %v2956_v2 = vadd.f32 0.0001, %v5147_v27  ;;  %v2993_v50 = vmul.f32 %v2977_v49, %v5085_v26 }
 0x28b   :  { %v3151_v38 = vadd.f32 %v3150_v48, %v3149_v3  ;;  %v3156_v57 = vadd.f32 %v3155_v39, %v3154_v58  ;;  %4268 = vrcp.f32 %v5108_v1  ;;  %v2969_v46 = vmul.f32 2.0, %v2921_v13 }
 0x28c   :  { %v3106_v15 = vmul.f32 %v4257_v52, %v2994_v33  ;;  %v2986_v62 = vadd.f32 0.0009, %v2970_v35  ;;  %v2955_v17 = vadd.f32 0.0001, %v2939_v36  ;;  %4270 = vrcp.f32 %v5111_v9 }
 0x28d   :  { %v3157_v43 = vrot.slane %v3156_v57, 2  ;;  %v3105_v21 = vmul.f32 %v4259_v51, %v2993_v50  ;;  %4272 = vrcp.f32 %v5160_v59  ;;  %v2985_v20 = vadd.f32 0.0009, %v2969_v46 }
 0x28e   :  { %v3136_v31 = vsel %vm3124_vm1, %v3106_v15, 0.0  ;;  %v3002_v27 = vmul.f32 %v2986_v62, %v5135_v24  ;;  %4274 = vrcp.f32 %v5163_v10  ;;  %v3152_v26 = vrot.slane %v3151_v38, 1 }
 0x28f   :  { %v3158_v1 = vadd.f32 %v3157_v43, %v3156_v57  ;;  %v3135_v52 = vsel %vm3124_vm1, %v3105_v21, 0.0  ;;  %v3001_v42 = vmul.f32 %v2985_v20, %v2953_v11  ;;  %v2916_v59 = vsub.f32 %v5181_v44, %v4943_v22 }
 0x290   :  { %v3161_v55 = vadd.f32 %v3136_v31, %v3135_v52  ;;  %v3114_v9 = vmul.f32 %v4265_v5, %v3002_v27  ;;  %v3176_v51 = vrot.slane %v5190_v18, 4  ;;  %v2915_v24 = vsub.f32 %v5186_v61, %v4947_v29 }
 0x291   :  { %v3159_v19 = vrot.slane %v3158_v1, 1  ;;  %v2924_v10 = vsub.f32 %v5188_v7, %v5307_v4  ;;  %v3113_v37 = vmul.f32 %v4267_v60, %v3001_v42  ;;  %v2964_v40 = vmul.f32 2.0, %v2916_v59 }
 0x292   :  { %v3162_v53 = vrot.slane %v3161_v55, 4  ;;  %v3144_v28 = vsel %vm3124_vm1, %v3114_v9, 0.0  ;;  %v2963_v14 = vmul.f32 2.0, %v2915_v24  ;;  %v2923_v22 = vsub.f32 %v5194_v23, %v5312_v30 }
 0x293   :  { %v3160_v8 = vadd.f32 %v3159_v19, %v3158_v1  ;;  %v2972_v32 = vmul.f32 2.0, %v2924_v10  ;;  %v3153_v44 = vadd.f32 %v3152_v26, %v3151_v38  ;;  %v3143_v29 = vsel %vm3124_vm1, %v3113_v37, 0.0 }
 0x294   :  { %v3163_v5 = vadd.f32 %v3162_v53, %v3161_v55  ;;  %v2980_v61 = vadd.f32 0.0009, %v2964_v40  ;;  %v3189_v63 = vadd.f32 %v3144_v28, %v3143_v29  ;;  %v2979_v4 = vadd.f32 0.0009, %v2963_v14 }
 0x295   :  { %v2988_v7 = vadd.f32 0.0009, %v2972_v32  ;;  %v2971_v45 = vmul.f32 2.0, %v2923_v22  ;;  %v4269_v12 = vpop.eup %4268  ;;  %v3183_v3 = vrot.slane %v5208_v25, 4  ;;  %v3212_v47 = vsel %vm3211_vm2, %v3160_v8, %v3153_v44 }
 0x296   :  { %v3164_v58 = vrot.slane %v3163_v5, 2  ;;  %v2996_v54 = vmul.f32 %v2980_v61, %v5089_v56  ;;  %v4271_v36 = vpop.eup %4270  ;;  %v3190_v23 = vrot.slane %v3189_v63, 4  ;;  %v2995_v30 = vmul.f32 %v2979_v4, %v5098_v41 }
 0x297   :  { %v3004_v0 = vmul.f32 %v2988_v7, %v2956_v2  ;;  %v2987_v6 = vadd.f32 0.0009, %v2971_v45  ;;  %v4273_v16 = vpop.eup %4272  ;;  %v3177_v11 = vadd.f32 %v3176_v51, %v5190_v18  ;;  %v3184_v38 = vadd.f32 %v3183_v3, %v5208_v25 }
 0x298   :  { %v3165_v48 = vadd.f32 %v3164_v58, %v3163_v5  ;;  %v3108_v39 = vmul.f32 %v4269_v12, %v2996_v54  ;;  %v4275_v49 = vpop.eup %4274  ;;  %v3107_v33 = vmul.f32 %v4271_v36, %v2995_v30  ;;  %v3191_v50 = vadd.f32 %v3190_v23, %v3189_v63 }
 0x299   :  { %v3116_v35 = vmul.f32 %v4273_v16, %v3004_v0  ;;  %v3003_v13 = vmul.f32 %v2987_v6, %v2955_v17  ;;  %v3178_v46 = vrot.slane %v3177_v11, 2  ;;  %v3185_v25 = vrot.slane %v3184_v38, 2 }
 0x29a   :  { %v3166_v56 = vrot.slane %v3165_v48, 1  ;;  %v3138_v57 = vsel %vm3124_vm1, %v3108_v39, 0.0  ;;  %v3137_v41 = vsel %vm3124_vm1, %v3107_v33, 0.0  ;;  %v3192_v27 = vrot.slane %v3191_v50, 2 }
 0x29b   :  { %v3146_v2 = vsel %vm3124_vm1, %v3116_v35, 0.0  ;;  %v3115_v15 = vmul.f32 %v4275_v49, %v3003_v13  ;;  %v3168_v18 = vadd.f32 %v3138_v57, %v3137_v41  ;;  %v3179_v1 = vadd.f32 %v3178_v46, %v3177_v11 }
 0x29c   :  { %v3167_v62 = vadd.f32 %v3166_v56, %v3165_v48  ;;  %v3186_v52 = vadd.f32 %v3185_v25, %v3184_v38  ;;  %v3193_v9 = vadd.f32 %v3192_v27, %v3191_v50 }
 0x29d   :  { %v3145_v17 = vsel %vm3124_vm1, %v3115_v15, 0.0  ;;  %v3169_v43 = vrot.slane %v3168_v18, 4  ;;  %v3180_v51 = vrot.slane %v3179_v1, 1 }
 0x29e   :  { %v3196_v21 = vadd.f32 %v3146_v2, %v3145_v17  ;;  %v3214_v31 = vsel %vm3213_vm3, %v3167_v62, %v3212_v47  ;;  %v3187_v24 = vrot.slane %v3186_v52, 1  ;;  %v3194_v34 = vrot.slane %v3193_v9, 1 }
 0x29f   :  { %v3170_v20 = vadd.f32 %v3169_v43, %v3168_v18  ;;  %v3181_v37 = vadd.f32 %v3180_v51, %v3179_v1 }
 0x2a0   :  { %v3197_v26 = vrot.slane %v3196_v21, 4  ;;  %v3188_v40 = vadd.f32 %v3187_v24, %v3186_v52  ;;  %v3195_v14 = vadd.f32 %v3194_v34, %v3193_v9 }
 0x2a1   :  { %v3171_v60 = vrot.slane %v3170_v20, 2 }
 0x2a2   :  { %v3198_v55 = vadd.f32 %v3197_v26, %v3196_v21 }
 0x2a3   :  { %v3172_v42 = vadd.f32 %v3171_v60, %v3170_v20 }
 0x2a4   :  { %v3199_v59 = vrot.slane %v3198_v55, 2 }
 0x2a5   :  { %v3173_v19 = vrot.slane %v3172_v42, 1 }
 0x2a6   :  { %v3200_v10 = vadd.f32 %v3199_v59, %v3198_v55 }
 0x2a7   :  { %v3174_v53 = vadd.f32 %v3173_v19, %v3172_v42 }
 0x2a8   :  { %v3201_v28 = vrot.slane %v3200_v10, 1 }
 0x2a9   :  { %v3216_v8 = vsel %vm3215_vm4, %v3174_v53, %v3214_v31 }
 0x2aa   :  { %v3218_v32 = vsel %vm3217_vm5, %v3181_v37, %v3216_v8  ;;  %v3202_v22 = vadd.f32 %v3201_v28, %v3200_v10 }
 0x2ab   :  { %v3220_v44 = vsel %vm3219_vm6, %v3188_v40, %v3218_v32 }
 0x2ac   :  { %v3222_v5 = vsel %vm3221_vm7, %v3195_v14, %v3220_v44 }
 0x2ad   :  { %v3224_v29 = vsel %vm3223_vm8, %v3202_v22, %v3222_v5 }
 0x2ae   :  { %3226 = vst [vmem:[#allocation10] sm:$0xff] %v3224_v29 }
 0x2af   :  { %4375 = shalt.err (!%p4372_p8)
}
 0x2b0   :  { %s4376_s13 = scalar_lea.hbm %s5267_s4, 128 }
 0x2b1   :  { %p4377_p9 = scmp.ne.s32.totalorder %s5267_s4, %s4376_s13  ;;  %p4380_p10 = scmp.lt.u32.totalorder %s4376_s13, %s5267_s4 }
 0x2b3   :  { %p4382_p11 = pnand %p4380_p10, %p4377_p9 }
 0x2b5   :  { %4385 = shalt.err (!%p4382_p11)
}
 0x2b6   :  { %3236 = dma.vmem_to_hbm [thread:$0]  %s3234_s27, 128, %s5267_s4, [#allocation4]  }
 0x2b7   :  { %4392 = dma.done.wait [#allocation4], 128  }
 0x2b8   :  { %4393 = vsyncadd [#allocation4], 4294967168 }
 0x2b9   :  { %3240 = vsyncpa [#allocation3], 1 }
 0x2ba   :  { %3241 = vsyncpa [#allocation6], 1 }
 0x2bb   :  { %3242 = vsyncpa [#allocation9], 1 }
 0x2bc   :  { %3243 = vsyncpa [#allocation4], 1 }

</bundles_post_ra>
